<compile_context>
chip_gen: v7x
topology: tpu7x:2x2x1
jax: 0.10.0
libtpu: 0.0.40
codegen_flags: <defaults>
</compile_context>

<pallas_src>
import functools

import jax
import jax.numpy as jnp
from jax.experimental import pallas as pl
from jax.experimental.pallas import tpu as pltpu

# ---- small, self-consistent config (module uses 384/256/6/6; we shrink it) ----
VOCAB      = 65
VOCAB_PAD  = 128           # lane-dense padded vocab for the kernel output
N_EMBID    = 48            # divisible by N_HEADS
BLOCK_SIZE = 16
N_HEADS    = 6
HEAD_SIZE  = N_EMBID // N_HEADS
N_LAYER    = 2
EPS        = 1e-5          # torch.nn.LayerNorm default
# dropout = 0.2 in the module; identity in eval mode (inference kernel).


# ----------------------------- kernel helpers ---------------------------------
def _layernorm(x, gamma, beta):
    mu = jnp.mean(x, axis=-1, keepdims=True)
    var = jnp.mean((x - mu) ** 2, axis=-1, keepdims=True)
    return (x - mu) * jax.lax.rsqrt(var + EPS) * gamma + beta


def _full_spec(shape):
    n = len(shape)
    return pl.BlockSpec(shape, lambda b, n=n: (0,) * n)


# --------------------------- fused forward kernel ------------------------------
def gpt_kernel(x_ref,
               ln1g_ref, ln1b_ref, wqkv_ref, wp_ref, bp_ref,
               ln2g_ref, ln2b_ref, w1_ref, b1_ref, w2_ref, b2_ref,
               lnfg_ref, lnfb_ref, wlm_ref, blm_ref,
               o_ref, *, n_layer):
    """Full GPT forward for one sequence tile [T, C] -> padded logits [T, 128]."""
    f32 = jnp.float32
    bf16 = jnp.bfloat16

    x = x_ref[...]                                   # [T, C] f32
    T, C = x.shape
    H, hs = N_HEADS, HEAD_SIZE

    # Causal additive bias, hoisted out of the layer loop (finite, no -inf/NaN).
    row = jax.lax.broadcasted_iota(jnp.int32, (T, T), 0)
    col = jax.lax.broadcasted_iota(jnp.int32, (T, T), 1)
    bias = jnp.where(col <= row, 0.0, -1e30).astype(f32)[None]      # [1, T, T]

    def split_heads(m2d):                            # [T, H*hs] -> [H, T, hs]
        return jnp.stack([m2d[:, h * hs:(h + 1) * hs] for h in range(H)], axis=0)

    for l in range(n_layer):                         # static, unrolled
        # ---------------- multi-head self-attention sub-block ----------------
        ln1 = _layernorm(x, ln1g_ref[l], ln1b_ref[l])               # [T, C] f32
        qkv = jnp.dot(ln1.astype(bf16), wqkv_ref[l],
                      preferred_element_type=f32)                   # [T, 3C]

        q = split_heads(qkv[:, 0 * C:1 * C])         # scale already folded in Wq
        k = split_heads(qkv[:, 1 * C:2 * C])
        v = split_heads(qkv[:, 2 * C:3 * C])         # [H, T, hs] each, f32

        s = jnp.einsum('hqd,hkd->hqk', q, k,
                       preferred_element_type=f32) + bias           # [H, T, T]
        s = s - jnp.max(s, axis=-1, keepdims=True)
        p = jnp.exp(s)
        denom = jnp.sum(p, axis=-1, keepdims=True)                  # [H, T, 1]

        oh = jnp.einsum('hqk,hkd->hqd', p.astype(bf16), v.astype(bf16),
                        preferred_element_type=f32)                 # [H, T, hs]
        oh = oh * pl.reciprocal(denom, approx=True)  # normalize after PV (EUP)

        # lane-concat heads back to [T, C], one dense output projection
        att = jnp.concatenate([oh[h] for h in range(H)], axis=-1)   # [T, C]
        x = x + jnp.dot(att.astype(bf16), wp_ref[l],
                        preferred_element_type=f32) + bp_ref[l]

        # ------------------------- feed-forward sub-block --------------------
        ln2 = _layernorm(x, ln2g_ref[l], ln2b_ref[l])
        h1 = jnp.dot(ln2.astype(bf16), w1_ref[l],
                     preferred_element_type=f32) + b1_ref[l]        # [T, 4C]
        h1 = jnp.maximum(h1, 0.0)                                   # ReLU (f32)
        y = jnp.dot(h1.astype(bf16), w2_ref[l],
                    preferred_element_type=f32) + b2_ref[l]         # [T, C]
        x = x + y

    # -------------------- final layernorm + lm_head (padded) ------------------
    lnf = _layernorm(x, lnfg_ref[...], lnfb_ref[...])
    o_ref[...] = jnp.dot(lnf.astype(bf16), wlm_ref[...],
                         preferred_element_type=f32) + blm_ref[...]  # [T, 128]


# ----------------------------- pallas_call wrapper -----------------------------
def gpt_forward(packed, idx):
    B, T = idx.shape
    # TODO(synk): token/position embedding gathers stay in plain JAX (glue, not hot path).
    tok = jnp.take(packed["tok_emb"], idx, axis=0)                  # [B, T, C]
    x = (tok + packed["pos_emb"][:T]).astype(jnp.float32).reshape(B * T, N_EMBID)

    ins = (x,
           packed["ln1_g"], packed["ln1_b"],
           packed["wqkv"], packed["wp"], packed["bp"],
           packed["ln2_g"], packed["ln2_b"],
           packed["w1"], packed["b1"], packed["w2"], packed["b2"],
           packed["lnf_g"], packed["lnf_b"], packed["wlm"], packed["blm"])

    in_specs = [pl.BlockSpec((T, N_EMBID), lambda b: (b, 0))] + \
               [_full_spec(a.shape) for a in ins[1:]]

    kernel = functools.partial(gpt_kernel, n_layer=N_LAYER)
    logits_pad = pl.pallas_call(
        kernel,
        out_shape=jax.ShapeDtypeStruct((B * T, VOCAB_PAD), jnp.float32),
        grid=(B,),
        in_specs=in_specs,
        out_specs=pl.BlockSpec((T, VOCAB_PAD), lambda b: (b, 0)),
        compiler_params=pltpu.CompilerParams(
            dimension_semantics=("parallel",)),      # megacore-shardable on v7x
    )(*ins)

    # slice the lane-padding back to the real vocab before any use of logits
    return logits_pad[:, :VOCAB].reshape(B, T, VOCAB)


# ----------------------- deterministic parameter init --------------------------
def init_params(key):
    def nrm(k, shape, scale=0.02):
        w = (scale * jax.random.normal(k, shape)).astype(jnp.float32)
        # snap to bf16-representable values so kernel bf16 operands are exact
        return w.astype(jnp.bfloat16).astype(jnp.float32)

    keys = jax.random.split(key, 4 + N_LAYER)
    params = {
        "tok_emb": nrm(keys[0], (VOCAB, N_EMBID)),
        "pos_emb": nrm(keys[1], (BLOCK_SIZE, N_EMBID)),
        "lnf_g": jnp.ones((1, N_EMBID), jnp.float32),
        "lnf_b": jnp.zeros((1, N_EMBID), jnp.float32),
        "wlm": nrm(keys[2], (N_EMBID, VOCAB)),
        "blm": jnp.zeros((1, VOCAB), jnp.float32),
        "blocks": [],
    }
    for li in range(N_LAYER):
        ks = jax.random.split(keys[4 + li], 6)
        params["blocks"].append({
            "ln1_g": jnp.ones((1, N_EMBID), jnp.float32),
            "ln1_b": jnp.zeros((1, N_EMBID), jnp.float32),
            "wq": nrm(ks[0], (N_EMBID, N_EMBID)),
            "wk": nrm(ks[1], (N_EMBID, N_EMBID)),
            "wv": nrm(ks[2], (N_EMBID, N_EMBID)),
            "wp": nrm(ks[3], (N_EMBID, N_EMBID)),
            "bp": jnp.zeros((1, N_EMBID), jnp.float32),
            "ln2_g": jnp.ones((1, N_EMBID), jnp.float32),
            "ln2_b": jnp.zeros((1, N_EMBID), jnp.float32),
            "w1": nrm(ks[4], (N_EMBID, 4 * N_EMBID)),
            "b1": jnp.zeros((1, 4 * N_EMBID), jnp.float32),
            "w2": nrm(ks[5], (4 * N_EMBID, N_EMBID)),
            "b2": jnp.zeros((1, N_EMBID), jnp.float32),
        })
    return params


def pack_params(p):
    """Stack per-layer weights, fuse Wq|Wk|Wv (scale folded into Wq),
    pad lm_head to 128 lanes, bf16 matmul weights."""
    L, C = N_LAYER, N_EMBID
    bf = jnp.bfloat16
    st = lambda k: jnp.stack([blk[k] for blk in p["blocks"]])
    scale = float(C) ** -0.5                         # reference: n_embid**-0.5

    wqkv = jnp.concatenate([st("wq") * scale, st("wk"), st("wv")],
                           axis=-1).astype(bf)       # [L, C, 3C]

    wlm_pad = jnp.zeros((C, VOCAB_PAD), jnp.float32).at[:, :VOCAB].set(p["wlm"]).astype(bf)
    blm_pad = jnp.zeros((1, VOCAB_PAD), jnp.float32).at[:, :VOCAB].set(p["blm"])

    return {
        "tok_emb": p["tok_emb"], "pos_emb": p["pos_emb"],
        "ln1_g": st("ln1_g"), "ln1_b": st("ln1_b"),
        "wqkv": wqkv,
        "wp": st("wp").astype(bf), "bp": st("bp"),
        "ln2_g": st("ln2_g"), "ln2_b": st("ln2_b"),
        "w1": st("w1").astype(bf), "b1": st("b1"),
        "w2": st("w2").astype(bf), "b2": st("b2"),
        "lnf_g": p["lnf_g"], "lnf_b": p["lnf_b"],
        "wlm": wlm_pad, "blm": blm_pad,
    }


# ------------------------------ pure-JAX reference ------------------------------
def _ref_forward(params, idx):
    hp = jax.lax.Precision.HIGHEST

    def ln(x, g, b):
        mu = jnp.mean(x, -1, keepdims=True)
        var = jnp.mean((x - mu) ** 2, -1, keepdims=True)
        return (x - mu) * jax.lax.rsqrt(var + EPS) * g + b

    B, T = idx.shape
    x = jnp.take(params["tok_emb"], idx, axis=0) + params["pos_emb"][:T]
    for lp in params["blocks"]:
        h = ln(x, lp["ln1_g"][0], lp["ln1_b"][0])
        q = jnp.einsum("btc,cd->btd", h, lp["wq"], precision=hp)
        k = jnp.einsum("btc,cd->btd", h, lp["wk"], precision=hp)
        v = jnp.einsum("btc,cd->btd", h, lp["wv"], precision=hp)
        q = q.reshape(B, T, N_HEADS, HEAD_SIZE)
        k = k.reshape(B, T, N_HEADS, HEAD_SIZE)
        v = v.reshape(B, T, N_HEADS, HEAD_SIZE)
        s = jnp.einsum("bqhd,bkhd->bhqk", q, k, precision=hp) / jnp.sqrt(float(N_EMBID))
        mask = jnp.tril(jnp.ones((T, T), bool))
        s = jnp.where(mask[None, None], s, -jnp.inf)
        p = jax.nn.softmax(s, axis=-1)
        o = jnp.einsum("bhqk,bkhd->bqhd", p, v, precision=hp).reshape(B, T, N_EMBID)
        x = x + jnp.einsum("btc,cd->btd", o, lp["wp"], precision=hp) + lp["bp"][0]
        h = ln(x, lp["ln2_g"][0], lp["ln2_b"][0])
        h = jax.nn.relu(jnp.einsum("btc,cd->btd", h, lp["w1"], precision=hp) + lp["b1"][0])
        x = x + jnp.einsum("btc,cd->btd", h, lp["w2"], precision=hp) + lp["b2"][0]
    x = ln(x, params["lnf_g"][0], params["lnf_b"][0])
    return jnp.einsum("btc,cv->btv", x, params["wlm"], precision=hp) + params["blm"][0]


# ------------------------------------ main --------------------------------------
if __name__ == "__main__":
    key = jax.random.PRNGKey(0)
    pkey, ikey = jax.random.split(key)
    params = init_params(pkey)
    packed = pack_params(params)

    B, T = 2, 8
    idx = jax.random.randint(ikey, (B, T), 0, VOCAB, dtype=jnp.int32)

    logits = jax.jit(gpt_forward)(packed, idx)
    logits = jax.block_until_ready(logits)

    assert logits.shape == (B, T, VOCAB), logits.shape
    ref = _ref_forward(params, idx)
    assert jnp.allclose(logits, ref, atol=1e-2, rtol=1e-2), \
        float(jnp.max(jnp.abs(logits - ref)))

    print("KERNEL_OK")
</pallas_src>

<mosaic_0001>
module attributes {stable_mosaic.version = 11 : i64} {
  func.func @gpt_kernel(%arg0: i32, %arg1: memref<8x48xf32, #tpu.memory_space<vmem>>, %arg2: memref<2x1x48xf32, #tpu.memory_space<vmem>>, %arg3: memref<2x1x48xf32, #tpu.memory_space<vmem>>, %arg4: memref<2x48x144xbf16, #tpu.memory_space<vmem>>, %arg5: memref<2x48x48xbf16, #tpu.memory_space<vmem>>, %arg6: memref<2x1x48xf32, #tpu.memory_space<vmem>>, %arg7: memref<2x1x48xf32, #tpu.memory_space<vmem>>, %arg8: memref<2x1x48xf32, #tpu.memory_space<vmem>>, %arg9: memref<2x48x192xbf16, #tpu.memory_space<vmem>>, %arg10: memref<2x1x192xf32, #tpu.memory_space<vmem>>, %arg11: memref<2x192x48xbf16, #tpu.memory_space<vmem>>, %arg12: memref<2x1x48xf32, #tpu.memory_space<vmem>>, %arg13: memref<1x48xf32, #tpu.memory_space<vmem>>, %arg14: memref<1x48xf32, #tpu.memory_space<vmem>>, %arg15: memref<48x128xbf16, #tpu.memory_space<vmem>>, %arg16: memref<1x128xf32, #tpu.memory_space<vmem>>, %arg17: memref<8x128xf32, #tpu.memory_space<vmem>>) attributes {dimension_semantics = [#tpu.dimension_semantics<parallel>], iteration_bounds = array<i64: 2>, scalar_prefetch = 0 : i64, scratch_operands = 0 : i64, tpu.core_type = #tpu.core_type<tc>, window_params = [{transform_indices = @transform_0, window_bounds = array<i64: 8, 48>}, {pipeline_mode = #tpu.pipeline_mode<synchronous>, transform_indices = @transform_1, window_bounds = array<i64: 2, 1, 48>}, {pipeline_mode = #tpu.pipeline_mode<synchronous>, transform_indices = @transform_2, window_bounds = array<i64: 2, 1, 48>}, {pipeline_mode = #tpu.pipeline_mode<synchronous>, transform_indices = @transform_3, window_bounds = array<i64: 2, 48, 144>}, {pipeline_mode = #tpu.pipeline_mode<synchronous>, transform_indices = @transform_4, window_bounds = array<i64: 2, 48, 48>}, {pipeline_mode = #tpu.pipeline_mode<synchronous>, transform_indices = @transform_5, window_bounds = array<i64: 2, 1, 48>}, {pipeline_mode = #tpu.pipeline_mode<synchronous>, transform_indices = @transform_6, window_bounds = array<i64: 2, 1, 48>}, {pipeline_mode = #tpu.pipeline_mode<synchronous>, transform_indices = @transform_7, window_bounds = array<i64: 2, 1, 48>}, {pipeline_mode = #tpu.pipeline_mode<synchronous>, transform_indices = @transform_8, window_bounds = array<i64: 2, 48, 192>}, {pipeline_mode = #tpu.pipeline_mode<synchronous>, transform_indices = @transform_9, window_bounds = array<i64: 2, 1, 192>}, {pipeline_mode = #tpu.pipeline_mode<synchronous>, transform_indices = @transform_10, window_bounds = array<i64: 2, 192, 48>}, {pipeline_mode = #tpu.pipeline_mode<synchronous>, transform_indices = @transform_11, window_bounds = array<i64: 2, 1, 48>}, {pipeline_mode = #tpu.pipeline_mode<synchronous>, transform_indices = @transform_12, window_bounds = array<i64: 1, 48>}, {pipeline_mode = #tpu.pipeline_mode<synchronous>, transform_indices = @transform_13, window_bounds = array<i64: 1, 48>}, {pipeline_mode = #tpu.pipeline_mode<synchronous>, transform_indices = @transform_14, window_bounds = array<i64: 48, 128>}, {pipeline_mode = #tpu.pipeline_mode<synchronous>, transform_indices = @transform_15, window_bounds = array<i64: 1, 128>}, {transform_indices = @transform_16, window_bounds = array<i64: 8, 128>}]} {
    %c0 = arith.constant 0 : index
    %c0_0 = arith.constant 0 : index
    %0 = vector.load %arg1[%c0, %c0_0] : memref<8x48xf32, #tpu.memory_space<vmem>>, vector<8x48xf32>
    %1 = tpu.iota {dimensions = array<i32: 0>} : vector<8x8xi32>
    %2 = tpu.iota {dimensions = array<i32: 1>} : vector<8x8xi32>
    %3 = arith.cmpi sle, %2, %1 : vector<8x8xi32>
    %cst = arith.constant 0.000000e+00 : f32
    %cst_1 = arith.constant -1.000000e+30 : f32
    %4 = vector.broadcast %cst : f32 to vector<8x8xf32>
    %5 = vector.broadcast %cst_1 : f32 to vector<8x8xf32>
    %6 = arith.select %3, %4, %5 : vector<8x8xi1>, vector<8x8xf32>
    %7 = vector.shape_cast %6 : vector<8x8xf32> to vector<1x8x8xf32>
    %c0_2 = arith.constant 0 : index
    %c0_3 = arith.constant 0 : index
    %c0_4 = arith.constant 0 : index
    %8 = vector.load %arg2[%c0_2, %c0_3, %c0_4] : memref<2x1x48xf32, #tpu.memory_space<vmem>>, vector<1x1x48xf32>
    %9 = vector.shape_cast %8 : vector<1x1x48xf32> to vector<1x48xf32>
    %c0_5 = arith.constant 0 : index
    %c0_6 = arith.constant 0 : index
    %c0_7 = arith.constant 0 : index
    %10 = vector.load %arg3[%c0_5, %c0_6, %c0_7] : memref<2x1x48xf32, #tpu.memory_space<vmem>>, vector<1x1x48xf32>
    %11 = vector.shape_cast %10 : vector<1x1x48xf32> to vector<1x48xf32>
    %cst_8 = arith.constant dense<0.000000e+00> : vector<8xf32>
    %12 = vector.multi_reduction <add>, %0, %cst_8 [1] : vector<8x48xf32> to vector<8xf32>
    %13 = vector.shape_cast %12 : vector<8xf32> to vector<8x1xf32>
    %cst_9 = arith.constant 4.800000e+01 : f32
    %14 = vector.broadcast %cst_9 : f32 to vector<8x1xf32>
    %15 = arith.divf %13, %14 : vector<8x1xf32>
    %16 = vector.broadcast %15 : vector<8x1xf32> to vector<8x48xf32>
    %17 = arith.subf %0, %16 : vector<8x48xf32>
    %18 = arith.mulf %17, %17 : vector<8x48xf32>
    %cst_10 = arith.constant dense<0.000000e+00> : vector<8xf32>
    %19 = vector.multi_reduction <add>, %18, %cst_10 [1] : vector<8x48xf32> to vector<8xf32>
    %20 = vector.shape_cast %19 : vector<8xf32> to vector<8x1xf32>
    %cst_11 = arith.constant 4.800000e+01 : f32
    %21 = vector.broadcast %cst_11 : f32 to vector<8x1xf32>
    %22 = arith.divf %20, %21 : vector<8x1xf32>
    %23 = vector.broadcast %15 : vector<8x1xf32> to vector<8x48xf32>
    %24 = arith.subf %0, %23 : vector<8x48xf32>
    %cst_12 = arith.constant 9.99999974E-6 : f32
    %25 = vector.broadcast %cst_12 : f32 to vector<8x1xf32>
    %26 = arith.addf %22, %25 : vector<8x1xf32>
    %27 = math.rsqrt %26 : vector<8x1xf32>
    %28 = vector.broadcast %27 : vector<8x1xf32> to vector<8x48xf32>
    %29 = arith.mulf %24, %28 : vector<8x48xf32>
    %30 = vector.broadcast %9 : vector<1x48xf32> to vector<8x48xf32>
    %31 = arith.mulf %29, %30 : vector<8x48xf32>
    %32 = vector.broadcast %11 : vector<1x48xf32> to vector<8x48xf32>
    %33 = arith.addf %31, %32 : vector<8x48xf32>
    %34 = arith.truncf %33 : vector<8x48xf32> to vector<8x48xbf16>
    %c0_13 = arith.constant 0 : index
    %c0_14 = arith.constant 0 : index
    %c0_15 = arith.constant 0 : index
    %35 = vector.load %arg4[%c0_13, %c0_14, %c0_15] : memref<2x48x144xbf16, #tpu.memory_space<vmem>>, vector<1x48x144xbf16>
    %36 = vector.shape_cast %35 : vector<1x48x144xbf16> to vector<48x144xbf16>
    %cst_16 = arith.constant dense<0.000000e+00> : vector<8x144xf32>
    %37 = tpu.matmul %34, %36, %cst_16 {dimension_numbers = #tpu.dot_dimension_numbers<[1], [0], [0], [1], [0, 0, 1, 1], [], []>} : vector<8x48xbf16>, vector<48x144xbf16>, vector<8x144xf32> -> vector<8x144xf32>
    %38 = vector.extract_strided_slice %37 {offsets = [0, 0], sizes = [8, 48], strides = [1, 1]} : vector<8x144xf32> to vector<8x48xf32>
    %39 = vector.extract_strided_slice %38 {offsets = [0, 0], sizes = [8, 8], strides = [1, 1]} : vector<8x48xf32> to vector<8x8xf32>
    %40 = vector.extract_strided_slice %38 {offsets = [0, 8], sizes = [8, 8], strides = [1, 1]} : vector<8x48xf32> to vector<8x8xf32>
    %41 = vector.extract_strided_slice %38 {offsets = [0, 16], sizes = [8, 8], strides = [1, 1]} : vector<8x48xf32> to vector<8x8xf32>
    %42 = vector.extract_strided_slice %38 {offsets = [0, 24], sizes = [8, 8], strides = [1, 1]} : vector<8x48xf32> to vector<8x8xf32>
    %43 = vector.extract_strided_slice %38 {offsets = [0, 32], sizes = [8, 8], strides = [1, 1]} : vector<8x48xf32> to vector<8x8xf32>
    %44 = vector.extract_strided_slice %38 {offsets = [0, 40], sizes = [8, 8], strides = [1, 1]} : vector<8x48xf32> to vector<8x8xf32>
    %45 = vector.shape_cast %39 : vector<8x8xf32> to vector<1x8x8xf32>
    %46 = vector.shape_cast %40 : vector<8x8xf32> to vector<1x8x8xf32>
    %47 = vector.shape_cast %41 : vector<8x8xf32> to vector<1x8x8xf32>
    %48 = vector.shape_cast %42 : vector<8x8xf32> to vector<1x8x8xf32>
    %49 = vector.shape_cast %43 : vector<8x8xf32> to vector<1x8x8xf32>
    %50 = vector.shape_cast %44 : vector<8x8xf32> to vector<1x8x8xf32>
    %51 = tpu.concatenate %45, %46, %47, %48, %49, %50 in 0 : vector<1x8x8xf32>, vector<1x8x8xf32>, vector<1x8x8xf32>, vector<1x8x8xf32>, vector<1x8x8xf32>, vector<1x8x8xf32> -> vector<6x8x8xf32>
    %52 = vector.extract_strided_slice %37 {offsets = [0, 48], sizes = [8, 48], strides = [1, 1]} : vector<8x144xf32> to vector<8x48xf32>
    %53 = vector.extract_strided_slice %52 {offsets = [0, 0], sizes = [8, 8], strides = [1, 1]} : vector<8x48xf32> to vector<8x8xf32>
    %54 = vector.extract_strided_slice %52 {offsets = [0, 8], sizes = [8, 8], strides = [1, 1]} : vector<8x48xf32> to vector<8x8xf32>
    %55 = vector.extract_strided_slice %52 {offsets = [0, 16], sizes = [8, 8], strides = [1, 1]} : vector<8x48xf32> to vector<8x8xf32>
    %56 = vector.extract_strided_slice %52 {offsets = [0, 24], sizes = [8, 8], strides = [1, 1]} : vector<8x48xf32> to vector<8x8xf32>
    %57 = vector.extract_strided_slice %52 {offsets = [0, 32], sizes = [8, 8], strides = [1, 1]} : vector<8x48xf32> to vector<8x8xf32>
    %58 = vector.extract_strided_slice %52 {offsets = [0, 40], sizes = [8, 8], strides = [1, 1]} : vector<8x48xf32> to vector<8x8xf32>
    %59 = vector.shape_cast %53 : vector<8x8xf32> to vector<1x8x8xf32>
    %60 = vector.shape_cast %54 : vector<8x8xf32> to vector<1x8x8xf32>
    %61 = vector.shape_cast %55 : vector<8x8xf32> to vector<1x8x8xf32>
    %62 = vector.shape_cast %56 : vector<8x8xf32> to vector<1x8x8xf32>
    %63 = vector.shape_cast %57 : vector<8x8xf32> to vector<1x8x8xf32>
    %64 = vector.shape_cast %58 : vector<8x8xf32> to vector<1x8x8xf32>
    %65 = tpu.concatenate %59, %60, %61, %62, %63, %64 in 0 : vector<1x8x8xf32>, vector<1x8x8xf32>, vector<1x8x8xf32>, vector<1x8x8xf32>, vector<1x8x8xf32>, vector<1x8x8xf32> -> vector<6x8x8xf32>
    %66 = vector.extract_strided_slice %37 {offsets = [0, 96], sizes = [8, 48], strides = [1, 1]} : vector<8x144xf32> to vector<8x48xf32>
    %67 = vector.extract_strided_slice %66 {offsets = [0, 0], sizes = [8, 8], strides = [1, 1]} : vector<8x48xf32> to vector<8x8xf32>
    %68 = vector.extract_strided_slice %66 {offsets = [0, 8], sizes = [8, 8], strides = [1, 1]} : vector<8x48xf32> to vector<8x8xf32>
    %69 = vector.extract_strided_slice %66 {offsets = [0, 16], sizes = [8, 8], strides = [1, 1]} : vector<8x48xf32> to vector<8x8xf32>
    %70 = vector.extract_strided_slice %66 {offsets = [0, 24], sizes = [8, 8], strides = [1, 1]} : vector<8x48xf32> to vector<8x8xf32>
    %71 = vector.extract_strided_slice %66 {offsets = [0, 32], sizes = [8, 8], strides = [1, 1]} : vector<8x48xf32> to vector<8x8xf32>
    %72 = vector.extract_strided_slice %66 {offsets = [0, 40], sizes = [8, 8], strides = [1, 1]} : vector<8x48xf32> to vector<8x8xf32>
    %73 = vector.shape_cast %67 : vector<8x8xf32> to vector<1x8x8xf32>
    %74 = vector.shape_cast %68 : vector<8x8xf32> to vector<1x8x8xf32>
    %75 = vector.shape_cast %69 : vector<8x8xf32> to vector<1x8x8xf32>
    %76 = vector.shape_cast %70 : vector<8x8xf32> to vector<1x8x8xf32>
    %77 = vector.shape_cast %71 : vector<8x8xf32> to vector<1x8x8xf32>
    %78 = vector.shape_cast %72 : vector<8x8xf32> to vector<1x8x8xf32>
    %79 = tpu.concatenate %73, %74, %75, %76, %77, %78 in 0 : vector<1x8x8xf32>, vector<1x8x8xf32>, vector<1x8x8xf32>, vector<1x8x8xf32>, vector<1x8x8xf32>, vector<1x8x8xf32> -> vector<6x8x8xf32>
    "tpu.trace_start"() <{level = 10 : i32, message = "hqd,hkd->hqk"}> : () -> ()
    %cst_17 = arith.constant dense<0.000000e+00> : vector<6x8x8xf32>
    %80 = tpu.matmul %51, %65, %cst_17 {dimension_numbers = #tpu.dot_dimension_numbers<[2], [2], [1], [1], [0, 0, 0, 1, 1, 1], [0], [0]>} : vector<6x8x8xf32>, vector<6x8x8xf32>, vector<6x8x8xf32> -> vector<6x8x8xf32>
    "tpu.trace_stop"() : () -> ()
    %81 = vector.broadcast %7 : vector<1x8x8xf32> to vector<6x8x8xf32>
    %82 = arith.addf %80, %81 : vector<6x8x8xf32>
    %cst_18 = arith.constant dense<0xFF800000> : vector<6x8xf32>
    %83 = vector.multi_reduction <maximumf>, %82, %cst_18 [2] : vector<6x8x8xf32> to vector<6x8xf32>
    %84 = vector.shape_cast %83 : vector<6x8xf32> to vector<6x8x1xf32>
    %85 = vector.broadcast %84 : vector<6x8x1xf32> to vector<6x8x8xf32>
    %86 = arith.subf %82, %85 : vector<6x8x8xf32>
    %87 = math.exp %86 : vector<6x8x8xf32>
    %cst_19 = arith.constant dense<0.000000e+00> : vector<6x8xf32>
    %88 = vector.multi_reduction <add>, %87, %cst_19 [2] : vector<6x8x8xf32> to vector<6x8xf32>
    %89 = vector.shape_cast %88 : vector<6x8xf32> to vector<6x8x1xf32>
    %90 = arith.truncf %87 : vector<6x8x8xf32> to vector<6x8x8xbf16>
    %91 = arith.truncf %79 : vector<6x8x8xf32> to vector<6x8x8xbf16>
    "tpu.trace_start"() <{level = 10 : i32, message = "hqk,hkd->hqd"}> : () -> ()
    %cst_20 = arith.constant dense<0.000000e+00> : vector<6x8x8xf32>
    %92 = tpu.matmul %90, %91, %cst_20 {dimension_numbers = #tpu.dot_dimension_numbers<[2], [1], [1], [2], [0, 0, 0, 1, 1, 2], [0], [0]>} : vector<6x8x8xbf16>, vector<6x8x8xbf16>, vector<6x8x8xf32> -> vector<6x8x8xf32>
    "tpu.trace_stop"() : () -> ()
    %93 = tpu.reciprocal %89 {approx = true} : vector<6x8x1xf32> -> vector<6x8x1xf32>
    %94 = vector.broadcast %93 : vector<6x8x1xf32> to vector<6x8x8xf32>
    %95 = arith.mulf %92, %94 : vector<6x8x8xf32>
    %96 = vector.extract_strided_slice %95 {offsets = [0, 0, 0], sizes = [1, 8, 8], strides = [1, 1, 1]} : vector<6x8x8xf32> to vector<1x8x8xf32>
    %97 = vector.shape_cast %96 : vector<1x8x8xf32> to vector<8x8xf32>
    %98 = vector.extract_strided_slice %95 {offsets = [1, 0, 0], sizes = [1, 8, 8], strides = [1, 1, 1]} : vector<6x8x8xf32> to vector<1x8x8xf32>
    %99 = vector.shape_cast %98 : vector<1x8x8xf32> to vector<8x8xf32>
    %100 = vector.extract_strided_slice %95 {offsets = [2, 0, 0], sizes = [1, 8, 8], strides = [1, 1, 1]} : vector<6x8x8xf32> to vector<1x8x8xf32>
    %101 = vector.shape_cast %100 : vector<1x8x8xf32> to vector<8x8xf32>
    %102 = vector.extract_strided_slice %95 {offsets = [3, 0, 0], sizes = [1, 8, 8], strides = [1, 1, 1]} : vector<6x8x8xf32> to vector<1x8x8xf32>
    %103 = vector.shape_cast %102 : vector<1x8x8xf32> to vector<8x8xf32>
    %104 = vector.extract_strided_slice %95 {offsets = [4, 0, 0], sizes = [1, 8, 8], strides = [1, 1, 1]} : vector<6x8x8xf32> to vector<1x8x8xf32>
    %105 = vector.shape_cast %104 : vector<1x8x8xf32> to vector<8x8xf32>
    %106 = vector.extract_strided_slice %95 {offsets = [5, 0, 0], sizes = [1, 8, 8], strides = [1, 1, 1]} : vector<6x8x8xf32> to vector<1x8x8xf32>
    %107 = vector.shape_cast %106 : vector<1x8x8xf32> to vector<8x8xf32>
    %108 = tpu.concatenate %97, %99, %101, %103, %105, %107 in 1 : vector<8x8xf32>, vector<8x8xf32>, vector<8x8xf32>, vector<8x8xf32>, vector<8x8xf32>, vector<8x8xf32> -> vector<8x48xf32>
    %109 = arith.truncf %108 : vector<8x48xf32> to vector<8x48xbf16>
    %c0_21 = arith.constant 0 : index
    %c0_22 = arith.constant 0 : index
    %c0_23 = arith.constant 0 : index
    %110 = vector.load %arg5[%c0_21, %c0_22, %c0_23] : memref<2x48x48xbf16, #tpu.memory_space<vmem>>, vector<1x48x48xbf16>
    %111 = vector.shape_cast %110 : vector<1x48x48xbf16> to vector<48x48xbf16>
    %cst_24 = arith.constant dense<0.000000e+00> : vector<8x48xf32>
    %112 = tpu.matmul %109, %111, %cst_24 {dimension_numbers = #tpu.dot_dimension_numbers<[1], [0], [0], [1], [0, 0, 1, 1], [], []>} : vector<8x48xbf16>, vector<48x48xbf16>, vector<8x48xf32> -> vector<8x48xf32>
    %113 = arith.addf %0, %112 : vector<8x48xf32>
    %c0_25 = arith.constant 0 : index
    %c0_26 = arith.constant 0 : index
    %c0_27 = arith.constant 0 : index
    %114 = vector.load %arg6[%c0_25, %c0_26, %c0_27] : memref<2x1x48xf32, #tpu.memory_space<vmem>>, vector<1x1x48xf32>
    %115 = vector.shape_cast %114 : vector<1x1x48xf32> to vector<1x48xf32>
    %116 = vector.broadcast %115 : vector<1x48xf32> to vector<8x48xf32>
    %117 = arith.addf %113, %116 : vector<8x48xf32>
    %c0_28 = arith.constant 0 : index
    %c0_29 = arith.constant 0 : index
    %c0_30 = arith.constant 0 : index
    %118 = vector.load %arg7[%c0_28, %c0_29, %c0_30] : memref<2x1x48xf32, #tpu.memory_space<vmem>>, vector<1x1x48xf32>
    %119 = vector.shape_cast %118 : vector<1x1x48xf32> to vector<1x48xf32>
    %c0_31 = arith.constant 0 : index
    %c0_32 = arith.constant 0 : index
    %c0_33 = arith.constant 0 : index
    %120 = vector.load %arg8[%c0_31, %c0_32, %c0_33] : memref<2x1x48xf32, #tpu.memory_space<vmem>>, vector<1x1x48xf32>
    %121 = vector.shape_cast %120 : vector<1x1x48xf32> to vector<1x48xf32>
    %cst_34 = arith.constant dense<0.000000e+00> : vector<8xf32>
    %122 = vector.multi_reduction <add>, %117, %cst_34 [1] : vector<8x48xf32> to vector<8xf32>
    %123 = vector.shape_cast %122 : vector<8xf32> to vector<8x1xf32>
    %cst_35 = arith.constant 4.800000e+01 : f32
    %124 = vector.broadcast %cst_35 : f32 to vector<8x1xf32>
    %125 = arith.divf %123, %124 : vector<8x1xf32>
    %126 = vector.broadcast %125 : vector<8x1xf32> to vector<8x48xf32>
    %127 = arith.subf %117, %126 : vector<8x48xf32>
    %128 = arith.mulf %127, %127 : vector<8x48xf32>
    %cst_36 = arith.constant dense<0.000000e+00> : vector<8xf32>
    %129 = vector.multi_reduction <add>, %128, %cst_36 [1] : vector<8x48xf32> to vector<8xf32>
    %130 = vector.shape_cast %129 : vector<8xf32> to vector<8x1xf32>
    %cst_37 = arith.constant 4.800000e+01 : f32
    %131 = vector.broadcast %cst_37 : f32 to vector<8x1xf32>
    %132 = arith.divf %130, %131 : vector<8x1xf32>
    %133 = vector.broadcast %125 : vector<8x1xf32> to vector<8x48xf32>
    %134 = arith.subf %117, %133 : vector<8x48xf32>
    %cst_38 = arith.constant 9.99999974E-6 : f32
    %135 = vector.broadcast %cst_38 : f32 to vector<8x1xf32>
    %136 = arith.addf %132, %135 : vector<8x1xf32>
    %137 = math.rsqrt %136 : vector<8x1xf32>
    %138 = vector.broadcast %137 : vector<8x1xf32> to vector<8x48xf32>
    %139 = arith.mulf %134, %138 : vector<8x48xf32>
    %140 = vector.broadcast %119 : vector<1x48xf32> to vector<8x48xf32>
    %141 = arith.mulf %139, %140 : vector<8x48xf32>
    %142 = vector.broadcast %121 : vector<1x48xf32> to vector<8x48xf32>
    %143 = arith.addf %141, %142 : vector<8x48xf32>
    %144 = arith.truncf %143 : vector<8x48xf32> to vector<8x48xbf16>
    %c0_39 = arith.constant 0 : index
    %c0_40 = arith.constant 0 : index
    %c0_41 = arith.constant 0 : index
    %145 = vector.load %arg9[%c0_39, %c0_40, %c0_41] : memref<2x48x192xbf16, #tpu.memory_space<vmem>>, vector<1x48x192xbf16>
    %146 = vector.shape_cast %145 : vector<1x48x192xbf16> to vector<48x192xbf16>
    %cst_42 = arith.constant dense<0.000000e+00> : vector<8x192xf32>
    %147 = tpu.matmul %144, %146, %cst_42 {dimension_numbers = #tpu.dot_dimension_numbers<[1], [0], [0], [1], [0, 0, 1, 1], [], []>} : vector<8x48xbf16>, vector<48x192xbf16>, vector<8x192xf32> -> vector<8x192xf32>
    %c0_43 = arith.constant 0 : index
    %c0_44 = arith.constant 0 : index
    %c0_45 = arith.constant 0 : index
    %148 = vector.load %arg10[%c0_43, %c0_44, %c0_45] : memref<2x1x192xf32, #tpu.memory_space<vmem>>, vector<1x1x192xf32>
    %149 = vector.shape_cast %148 : vector<1x1x192xf32> to vector<1x192xf32>
    %150 = vector.broadcast %149 : vector<1x192xf32> to vector<8x192xf32>
    %151 = arith.addf %147, %150 : vector<8x192xf32>
    %cst_46 = arith.constant 0.000000e+00 : f32
    %152 = vector.broadcast %cst_46 : f32 to vector<8x192xf32>
    %153 = arith.maximumf %151, %152 : vector<8x192xf32>
    %154 = arith.truncf %153 : vector<8x192xf32> to vector<8x192xbf16>
    %c0_47 = arith.constant 0 : index
    %c0_48 = arith.constant 0 : index
    %c0_49 = arith.constant 0 : index
    %155 = vector.load %arg11[%c0_47, %c0_48, %c0_49] : memref<2x192x48xbf16, #tpu.memory_space<vmem>>, vector<1x192x48xbf16>
    %156 = vector.shape_cast %155 : vector<1x192x48xbf16> to vector<192x48xbf16>
    %cst_50 = arith.constant dense<0.000000e+00> : vector<8x48xf32>
    %157 = tpu.matmul %154, %156, %cst_50 {dimension_numbers = #tpu.dot_dimension_numbers<[1], [0], [0], [1], [0, 0, 1, 1], [], []>} : vector<8x192xbf16>, vector<192x48xbf16>, vector<8x48xf32> -> vector<8x48xf32>
    %c0_51 = arith.constant 0 : index
    %c0_52 = arith.constant 0 : index
    %c0_53 = arith.constant 0 : index
    %158 = vector.load %arg12[%c0_51, %c0_52, %c0_53] : memref<2x1x48xf32, #tpu.memory_space<vmem>>, vector<1x1x48xf32>
    %159 = vector.shape_cast %158 : vector<1x1x48xf32> to vector<1x48xf32>
    %160 = vector.broadcast %159 : vector<1x48xf32> to vector<8x48xf32>
    %161 = arith.addf %157, %160 : vector<8x48xf32>
    %162 = arith.addf %117, %161 : vector<8x48xf32>
    %c1 = arith.constant 1 : index
    %c0_54 = arith.constant 0 : index
    %c0_55 = arith.constant 0 : index
    %163 = vector.load %arg2[%c1, %c0_54, %c0_55] : memref<2x1x48xf32, #tpu.memory_space<vmem>>, vector<1x1x48xf32>
    %164 = vector.shape_cast %163 : vector<1x1x48xf32> to vector<1x48xf32>
    %c1_56 = arith.constant 1 : index
    %c0_57 = arith.constant 0 : index
    %c0_58 = arith.constant 0 : index
    %165 = vector.load %arg3[%c1_56, %c0_57, %c0_58] : memref<2x1x48xf32, #tpu.memory_space<vmem>>, vector<1x1x48xf32>
    %166 = vector.shape_cast %165 : vector<1x1x48xf32> to vector<1x48xf32>
    %cst_59 = arith.constant dense<0.000000e+00> : vector<8xf32>
    %167 = vector.multi_reduction <add>, %162, %cst_59 [1] : vector<8x48xf32> to vector<8xf32>
    %168 = vector.shape_cast %167 : vector<8xf32> to vector<8x1xf32>
    %cst_60 = arith.constant 4.800000e+01 : f32
    %169 = vector.broadcast %cst_60 : f32 to vector<8x1xf32>
    %170 = arith.divf %168, %169 : vector<8x1xf32>
    %171 = vector.broadcast %170 : vector<8x1xf32> to vector<8x48xf32>
    %172 = arith.subf %162, %171 : vector<8x48xf32>
    %173 = arith.mulf %172, %172 : vector<8x48xf32>
    %cst_61 = arith.constant dense<0.000000e+00> : vector<8xf32>
    %174 = vector.multi_reduction <add>, %173, %cst_61 [1] : vector<8x48xf32> to vector<8xf32>
    %175 = vector.shape_cast %174 : vector<8xf32> to vector<8x1xf32>
    %cst_62 = arith.constant 4.800000e+01 : f32
    %176 = vector.broadcast %cst_62 : f32 to vector<8x1xf32>
    %177 = arith.divf %175, %176 : vector<8x1xf32>
    %178 = vector.broadcast %170 : vector<8x1xf32> to vector<8x48xf32>
    %179 = arith.subf %162, %178 : vector<8x48xf32>
    %cst_63 = arith.constant 9.99999974E-6 : f32
    %180 = vector.broadcast %cst_63 : f32 to vector<8x1xf32>
    %181 = arith.addf %177, %180 : vector<8x1xf32>
    %182 = math.rsqrt %181 : vector<8x1xf32>
    %183 = vector.broadcast %182 : vector<8x1xf32> to vector<8x48xf32>
    %184 = arith.mulf %179, %183 : vector<8x48xf32>
    %185 = vector.broadcast %164 : vector<1x48xf32> to vector<8x48xf32>
    %186 = arith.mulf %184, %185 : vector<8x48xf32>
    %187 = vector.broadcast %166 : vector<1x48xf32> to vector<8x48xf32>
    %188 = arith.addf %186, %187 : vector<8x48xf32>
    %189 = arith.truncf %188 : vector<8x48xf32> to vector<8x48xbf16>
    %c1_64 = arith.constant 1 : index
    %c0_65 = arith.constant 0 : index
    %c0_66 = arith.constant 0 : index
    %190 = vector.load %arg4[%c1_64, %c0_65, %c0_66] : memref<2x48x144xbf16, #tpu.memory_space<vmem>>, vector<1x48x144xbf16>
    %191 = vector.shape_cast %190 : vector<1x48x144xbf16> to vector<48x144xbf16>
    %cst_67 = arith.constant dense<0.000000e+00> : vector<8x144xf32>
    %192 = tpu.matmul %189, %191, %cst_67 {dimension_numbers = #tpu.dot_dimension_numbers<[1], [0], [0], [1], [0, 0, 1, 1], [], []>} : vector<8x48xbf16>, vector<48x144xbf16>, vector<8x144xf32> -> vector<8x144xf32>
    %193 = vector.extract_strided_slice %192 {offsets = [0, 0], sizes = [8, 48], strides = [1, 1]} : vector<8x144xf32> to vector<8x48xf32>
    %194 = vector.extract_strided_slice %193 {offsets = [0, 0], sizes = [8, 8], strides = [1, 1]} : vector<8x48xf32> to vector<8x8xf32>
    %195 = vector.extract_strided_slice %193 {offsets = [0, 8], sizes = [8, 8], strides = [1, 1]} : vector<8x48xf32> to vector<8x8xf32>
    %196 = vector.extract_strided_slice %193 {offsets = [0, 16], sizes = [8, 8], strides = [1, 1]} : vector<8x48xf32> to vector<8x8xf32>
    %197 = vector.extract_strided_slice %193 {offsets = [0, 24], sizes = [8, 8], strides = [1, 1]} : vector<8x48xf32> to vector<8x8xf32>
    %198 = vector.extract_strided_slice %193 {offsets = [0, 32], sizes = [8, 8], strides = [1, 1]} : vector<8x48xf32> to vector<8x8xf32>
    %199 = vector.extract_strided_slice %193 {offsets = [0, 40], sizes = [8, 8], strides = [1, 1]} : vector<8x48xf32> to vector<8x8xf32>
    %200 = vector.shape_cast %194 : vector<8x8xf32> to vector<1x8x8xf32>
    %201 = vector.shape_cast %195 : vector<8x8xf32> to vector<1x8x8xf32>
    %202 = vector.shape_cast %196 : vector<8x8xf32> to vector<1x8x8xf32>
    %203 = vector.shape_cast %197 : vector<8x8xf32> to vector<1x8x8xf32>
    %204 = vector.shape_cast %198 : vector<8x8xf32> to vector<1x8x8xf32>
    %205 = vector.shape_cast %199 : vector<8x8xf32> to vector<1x8x8xf32>
    %206 = tpu.concatenate %200, %201, %202, %203, %204, %205 in 0 : vector<1x8x8xf32>, vector<1x8x8xf32>, vector<1x8x8xf32>, vector<1x8x8xf32>, vector<1x8x8xf32>, vector<1x8x8xf32> -> vector<6x8x8xf32>
    %207 = vector.extract_strided_slice %192 {offsets = [0, 48], sizes = [8, 48], strides = [1, 1]} : vector<8x144xf32> to vector<8x48xf32>
    %208 = vector.extract_strided_slice %207 {offsets = [0, 0], sizes = [8, 8], strides = [1, 1]} : vector<8x48xf32> to vector<8x8xf32>
    %209 = vector.extract_strided_slice %207 {offsets = [0, 8], sizes = [8, 8], strides = [1, 1]} : vector<8x48xf32> to vector<8x8xf32>
    %210 = vector.extract_strided_slice %207 {offsets = [0, 16], sizes = [8, 8], strides = [1, 1]} : vector<8x48xf32> to vector<8x8xf32>
    %211 = vector.extract_strided_slice %207 {offsets = [0, 24], sizes = [8, 8], strides = [1, 1]} : vector<8x48xf32> to vector<8x8xf32>
    %212 = vector.extract_strided_slice %207 {offsets = [0, 32], sizes = [8, 8], strides = [1, 1]} : vector<8x48xf32> to vector<8x8xf32>
    %213 = vector.extract_strided_slice %207 {offsets = [0, 40], sizes = [8, 8], strides = [1, 1]} : vector<8x48xf32> to vector<8x8xf32>
    %214 = vector.shape_cast %208 : vector<8x8xf32> to vector<1x8x8xf32>
    %215 = vector.shape_cast %209 : vector<8x8xf32> to vector<1x8x8xf32>
    %216 = vector.shape_cast %210 : vector<8x8xf32> to vector<1x8x8xf32>
    %217 = vector.shape_cast %211 : vector<8x8xf32> to vector<1x8x8xf32>
    %218 = vector.shape_cast %212 : vector<8x8xf32> to vector<1x8x8xf32>
    %219 = vector.shape_cast %213 : vector<8x8xf32> to vector<1x8x8xf32>
    %220 = tpu.concatenate %214, %215, %216, %217, %218, %219 in 0 : vector<1x8x8xf32>, vector<1x8x8xf32>, vector<1x8x8xf32>, vector<1x8x8xf32>, vector<1x8x8xf32>, vector<1x8x8xf32> -> vector<6x8x8xf32>
    %221 = vector.extract_strided_slice %192 {offsets = [0, 96], sizes = [8, 48], strides = [1, 1]} : vector<8x144xf32> to vector<8x48xf32>
    %222 = vector.extract_strided_slice %221 {offsets = [0, 0], sizes = [8, 8], strides = [1, 1]} : vector<8x48xf32> to vector<8x8xf32>
    %223 = vector.extract_strided_slice %221 {offsets = [0, 8], sizes = [8, 8], strides = [1, 1]} : vector<8x48xf32> to vector<8x8xf32>
    %224 = vector.extract_strided_slice %221 {offsets = [0, 16], sizes = [8, 8], strides = [1, 1]} : vector<8x48xf32> to vector<8x8xf32>
    %225 = vector.extract_strided_slice %221 {offsets = [0, 24], sizes = [8, 8], strides = [1, 1]} : vector<8x48xf32> to vector<8x8xf32>
    %226 = vector.extract_strided_slice %221 {offsets = [0, 32], sizes = [8, 8], strides = [1, 1]} : vector<8x48xf32> to vector<8x8xf32>
    %227 = vector.extract_strided_slice %221 {offsets = [0, 40], sizes = [8, 8], strides = [1, 1]} : vector<8x48xf32> to vector<8x8xf32>
    %228 = vector.shape_cast %222 : vector<8x8xf32> to vector<1x8x8xf32>
    %229 = vector.shape_cast %223 : vector<8x8xf32> to vector<1x8x8xf32>
    %230 = vector.shape_cast %224 : vector<8x8xf32> to vector<1x8x8xf32>
    %231 = vector.shape_cast %225 : vector<8x8xf32> to vector<1x8x8xf32>
    %232 = vector.shape_cast %226 : vector<8x8xf32> to vector<1x8x8xf32>
    %233 = vector.shape_cast %227 : vector<8x8xf32> to vector<1x8x8xf32>
    %234 = tpu.concatenate %228, %229, %230, %231, %232, %233 in 0 : vector<1x8x8xf32>, vector<1x8x8xf32>, vector<1x8x8xf32>, vector<1x8x8xf32>, vector<1x8x8xf32>, vector<1x8x8xf32> -> vector<6x8x8xf32>
    "tpu.trace_start"() <{level = 10 : i32, message = "hqd,hkd->hqk"}> : () -> ()
    %cst_68 = arith.constant dense<0.000000e+00> : vector<6x8x8xf32>
    %235 = tpu.matmul %206, %220, %cst_68 {dimension_numbers = #tpu.dot_dimension_numbers<[2], [2], [1], [1], [0, 0, 0, 1, 1, 1], [0], [0]>} : vector<6x8x8xf32>, vector<6x8x8xf32>, vector<6x8x8xf32> -> vector<6x8x8xf32>
    "tpu.trace_stop"() : () -> ()
    %236 = vector.broadcast %7 : vector<1x8x8xf32> to vector<6x8x8xf32>
    %237 = arith.addf %235, %236 : vector<6x8x8xf32>
    %cst_69 = arith.constant dense<0xFF800000> : vector<6x8xf32>
    %238 = vector.multi_reduction <maximumf>, %237, %cst_69 [2] : vector<6x8x8xf32> to vector<6x8xf32>
    %239 = vector.shape_cast %238 : vector<6x8xf32> to vector<6x8x1xf32>
    %240 = vector.broadcast %239 : vector<6x8x1xf32> to vector<6x8x8xf32>
    %241 = arith.subf %237, %240 : vector<6x8x8xf32>
    %242 = math.exp %241 : vector<6x8x8xf32>
    %cst_70 = arith.constant dense<0.000000e+00> : vector<6x8xf32>
    %243 = vector.multi_reduction <add>, %242, %cst_70 [2] : vector<6x8x8xf32> to vector<6x8xf32>
    %244 = vector.shape_cast %243 : vector<6x8xf32> to vector<6x8x1xf32>
    %245 = arith.truncf %242 : vector<6x8x8xf32> to vector<6x8x8xbf16>
    %246 = arith.truncf %234 : vector<6x8x8xf32> to vector<6x8x8xbf16>
    "tpu.trace_start"() <{level = 10 : i32, message = "hqk,hkd->hqd"}> : () -> ()
    %cst_71 = arith.constant dense<0.000000e+00> : vector<6x8x8xf32>
    %247 = tpu.matmul %245, %246, %cst_71 {dimension_numbers = #tpu.dot_dimension_numbers<[2], [1], [1], [2], [0, 0, 0, 1, 1, 2], [0], [0]>} : vector<6x8x8xbf16>, vector<6x8x8xbf16>, vector<6x8x8xf32> -> vector<6x8x8xf32>
    "tpu.trace_stop"() : () -> ()
    %248 = tpu.reciprocal %244 {approx = true} : vector<6x8x1xf32> -> vector<6x8x1xf32>
    %249 = vector.broadcast %248 : vector<6x8x1xf32> to vector<6x8x8xf32>
    %250 = arith.mulf %247, %249 : vector<6x8x8xf32>
    %251 = vector.extract_strided_slice %250 {offsets = [0, 0, 0], sizes = [1, 8, 8], strides = [1, 1, 1]} : vector<6x8x8xf32> to vector<1x8x8xf32>
    %252 = vector.shape_cast %251 : vector<1x8x8xf32> to vector<8x8xf32>
    %253 = vector.extract_strided_slice %250 {offsets = [1, 0, 0], sizes = [1, 8, 8], strides = [1, 1, 1]} : vector<6x8x8xf32> to vector<1x8x8xf32>
    %254 = vector.shape_cast %253 : vector<1x8x8xf32> to vector<8x8xf32>
    %255 = vector.extract_strided_slice %250 {offsets = [2, 0, 0], sizes = [1, 8, 8], strides = [1, 1, 1]} : vector<6x8x8xf32> to vector<1x8x8xf32>
    %256 = vector.shape_cast %255 : vector<1x8x8xf32> to vector<8x8xf32>
    %257 = vector.extract_strided_slice %250 {offsets = [3, 0, 0], sizes = [1, 8, 8], strides = [1, 1, 1]} : vector<6x8x8xf32> to vector<1x8x8xf32>
    %258 = vector.shape_cast %257 : vector<1x8x8xf32> to vector<8x8xf32>
    %259 = vector.extract_strided_slice %250 {offsets = [4, 0, 0], sizes = [1, 8, 8], strides = [1, 1, 1]} : vector<6x8x8xf32> to vector<1x8x8xf32>
    %260 = vector.shape_cast %259 : vector<1x8x8xf32> to vector<8x8xf32>
    %261 = vector.extract_strided_slice %250 {offsets = [5, 0, 0], sizes = [1, 8, 8], strides = [1, 1, 1]} : vector<6x8x8xf32> to vector<1x8x8xf32>
    %262 = vector.shape_cast %261 : vector<1x8x8xf32> to vector<8x8xf32>
    %263 = tpu.concatenate %252, %254, %256, %258, %260, %262 in 1 : vector<8x8xf32>, vector<8x8xf32>, vector<8x8xf32>, vector<8x8xf32>, vector<8x8xf32>, vector<8x8xf32> -> vector<8x48xf32>
    %264 = arith.truncf %263 : vector<8x48xf32> to vector<8x48xbf16>
    %c1_72 = arith.constant 1 : index
    %c0_73 = arith.constant 0 : index
    %c0_74 = arith.constant 0 : index
    %265 = vector.load %arg5[%c1_72, %c0_73, %c0_74] : memref<2x48x48xbf16, #tpu.memory_space<vmem>>, vector<1x48x48xbf16>
    %266 = vector.shape_cast %265 : vector<1x48x48xbf16> to vector<48x48xbf16>
    %cst_75 = arith.constant dense<0.000000e+00> : vector<8x48xf32>
    %267 = tpu.matmul %264, %266, %cst_75 {dimension_numbers = #tpu.dot_dimension_numbers<[1], [0], [0], [1], [0, 0, 1, 1], [], []>} : vector<8x48xbf16>, vector<48x48xbf16>, vector<8x48xf32> -> vector<8x48xf32>
    %268 = arith.addf %162, %267 : vector<8x48xf32>
    %c1_76 = arith.constant 1 : index
    %c0_77 = arith.constant 0 : index
    %c0_78 = arith.constant 0 : index
    %269 = vector.load %arg6[%c1_76, %c0_77, %c0_78] : memref<2x1x48xf32, #tpu.memory_space<vmem>>, vector<1x1x48xf32>
    %270 = vector.shape_cast %269 : vector<1x1x48xf32> to vector<1x48xf32>
    %271 = vector.broadcast %270 : vector<1x48xf32> to vector<8x48xf32>
    %272 = arith.addf %268, %271 : vector<8x48xf32>
    %c1_79 = arith.constant 1 : index
    %c0_80 = arith.constant 0 : index
    %c0_81 = arith.constant 0 : index
    %273 = vector.load %arg7[%c1_79, %c0_80, %c0_81] : memref<2x1x48xf32, #tpu.memory_space<vmem>>, vector<1x1x48xf32>
    %274 = vector.shape_cast %273 : vector<1x1x48xf32> to vector<1x48xf32>
    %c1_82 = arith.constant 1 : index
    %c0_83 = arith.constant 0 : index
    %c0_84 = arith.constant 0 : index
    %275 = vector.load %arg8[%c1_82, %c0_83, %c0_84] : memref<2x1x48xf32, #tpu.memory_space<vmem>>, vector<1x1x48xf32>
    %276 = vector.shape_cast %275 : vector<1x1x48xf32> to vector<1x48xf32>
    %cst_85 = arith.constant dense<0.000000e+00> : vector<8xf32>
    %277 = vector.multi_reduction <add>, %272, %cst_85 [1] : vector<8x48xf32> to vector<8xf32>
    %278 = vector.shape_cast %277 : vector<8xf32> to vector<8x1xf32>
    %cst_86 = arith.constant 4.800000e+01 : f32
    %279 = vector.broadcast %cst_86 : f32 to vector<8x1xf32>
    %280 = arith.divf %278, %279 : vector<8x1xf32>
    %281 = vector.broadcast %280 : vector<8x1xf32> to vector<8x48xf32>
    %282 = arith.subf %272, %281 : vector<8x48xf32>
    %283 = arith.mulf %282, %282 : vector<8x48xf32>
    %cst_87 = arith.constant dense<0.000000e+00> : vector<8xf32>
    %284 = vector.multi_reduction <add>, %283, %cst_87 [1] : vector<8x48xf32> to vector<8xf32>
    %285 = vector.shape_cast %284 : vector<8xf32> to vector<8x1xf32>
    %cst_88 = arith.constant 4.800000e+01 : f32
    %286 = vector.broadcast %cst_88 : f32 to vector<8x1xf32>
    %287 = arith.divf %285, %286 : vector<8x1xf32>
    %288 = vector.broadcast %280 : vector<8x1xf32> to vector<8x48xf32>
    %289 = arith.subf %272, %288 : vector<8x48xf32>
    %cst_89 = arith.constant 9.99999974E-6 : f32
    %290 = vector.broadcast %cst_89 : f32 to vector<8x1xf32>
    %291 = arith.addf %287, %290 : vector<8x1xf32>
    %292 = math.rsqrt %291 : vector<8x1xf32>
    %293 = vector.broadcast %292 : vector<8x1xf32> to vector<8x48xf32>
    %294 = arith.mulf %289, %293 : vector<8x48xf32>
    %295 = vector.broadcast %274 : vector<1x48xf32> to vector<8x48xf32>
    %296 = arith.mulf %294, %295 : vector<8x48xf32>
    %297 = vector.broadcast %276 : vector<1x48xf32> to vector<8x48xf32>
    %298 = arith.addf %296, %297 : vector<8x48xf32>
    %299 = arith.truncf %298 : vector<8x48xf32> to vector<8x48xbf16>
    %c1_90 = arith.constant 1 : index
    %c0_91 = arith.constant 0 : index
    %c0_92 = arith.constant 0 : index
    %300 = vector.load %arg9[%c1_90, %c0_91, %c0_92] : memref<2x48x192xbf16, #tpu.memory_space<vmem>>, vector<1x48x192xbf16>
    %301 = vector.shape_cast %300 : vector<1x48x192xbf16> to vector<48x192xbf16>
    %cst_93 = arith.constant dense<0.000000e+00> : vector<8x192xf32>
    %302 = tpu.matmul %299, %301, %cst_93 {dimension_numbers = #tpu.dot_dimension_numbers<[1], [0], [0], [1], [0, 0, 1, 1], [], []>} : vector<8x48xbf16>, vector<48x192xbf16>, vector<8x192xf32> -> vector<8x192xf32>
    %c1_94 = arith.constant 1 : index
    %c0_95 = arith.constant 0 : index
    %c0_96 = arith.constant 0 : index
    %303 = vector.load %arg10[%c1_94, %c0_95, %c0_96] : memref<2x1x192xf32, #tpu.memory_space<vmem>>, vector<1x1x192xf32>
    %304 = vector.shape_cast %303 : vector<1x1x192xf32> to vector<1x192xf32>
    %305 = vector.broadcast %304 : vector<1x192xf32> to vector<8x192xf32>
    %306 = arith.addf %302, %305 : vector<8x192xf32>
    %cst_97 = arith.constant 0.000000e+00 : f32
    %307 = vector.broadcast %cst_97 : f32 to vector<8x192xf32>
    %308 = arith.maximumf %306, %307 : vector<8x192xf32>
    %309 = arith.truncf %308 : vector<8x192xf32> to vector<8x192xbf16>
    %c1_98 = arith.constant 1 : index
    %c0_99 = arith.constant 0 : index
    %c0_100 = arith.constant 0 : index
    %310 = vector.load %arg11[%c1_98, %c0_99, %c0_100] : memref<2x192x48xbf16, #tpu.memory_space<vmem>>, vector<1x192x48xbf16>
    %311 = vector.shape_cast %310 : vector<1x192x48xbf16> to vector<192x48xbf16>
    %cst_101 = arith.constant dense<0.000000e+00> : vector<8x48xf32>
    %312 = tpu.matmul %309, %311, %cst_101 {dimension_numbers = #tpu.dot_dimension_numbers<[1], [0], [0], [1], [0, 0, 1, 1], [], []>} : vector<8x192xbf16>, vector<192x48xbf16>, vector<8x48xf32> -> vector<8x48xf32>
    %c1_102 = arith.constant 1 : index
    %c0_103 = arith.constant 0 : index
    %c0_104 = arith.constant 0 : index
    %313 = vector.load %arg12[%c1_102, %c0_103, %c0_104] : memref<2x1x48xf32, #tpu.memory_space<vmem>>, vector<1x1x48xf32>
    %314 = vector.shape_cast %313 : vector<1x1x48xf32> to vector<1x48xf32>
    %315 = vector.broadcast %314 : vector<1x48xf32> to vector<8x48xf32>
    %316 = arith.addf %312, %315 : vector<8x48xf32>
    %317 = arith.addf %272, %316 : vector<8x48xf32>
    %c0_105 = arith.constant 0 : index
    %c0_106 = arith.constant 0 : index
    %318 = vector.load %arg13[%c0_105, %c0_106] : memref<1x48xf32, #tpu.memory_space<vmem>>, vector<1x48xf32>
    %c0_107 = arith.constant 0 : index
    %c0_108 = arith.constant 0 : index
    %319 = vector.load %arg14[%c0_107, %c0_108] : memref<1x48xf32, #tpu.memory_space<vmem>>, vector<1x48xf32>
    %cst_109 = arith.constant dense<0.000000e+00> : vector<8xf32>
    %320 = vector.multi_reduction <add>, %317, %cst_109 [1] : vector<8x48xf32> to vector<8xf32>
    %321 = vector.shape_cast %320 : vector<8xf32> to vector<8x1xf32>
    %cst_110 = arith.constant 4.800000e+01 : f32
    %322 = vector.broadcast %cst_110 : f32 to vector<8x1xf32>
    %323 = arith.divf %321, %322 : vector<8x1xf32>
    %324 = vector.broadcast %323 : vector<8x1xf32> to vector<8x48xf32>
    %325 = arith.subf %317, %324 : vector<8x48xf32>
    %326 = arith.mulf %325, %325 : vector<8x48xf32>
    %cst_111 = arith.constant dense<0.000000e+00> : vector<8xf32>
    %327 = vector.multi_reduction <add>, %326, %cst_111 [1] : vector<8x48xf32> to vector<8xf32>
    %328 = vector.shape_cast %327 : vector<8xf32> to vector<8x1xf32>
    %cst_112 = arith.constant 4.800000e+01 : f32
    %329 = vector.broadcast %cst_112 : f32 to vector<8x1xf32>
    %330 = arith.divf %328, %329 : vector<8x1xf32>
    %331 = vector.broadcast %323 : vector<8x1xf32> to vector<8x48xf32>
    %332 = arith.subf %317, %331 : vector<8x48xf32>
    %cst_113 = arith.constant 9.99999974E-6 : f32
    %333 = vector.broadcast %cst_113 : f32 to vector<8x1xf32>
    %334 = arith.addf %330, %333 : vector<8x1xf32>
    %335 = math.rsqrt %334 : vector<8x1xf32>
    %336 = vector.broadcast %335 : vector<8x1xf32> to vector<8x48xf32>
    %337 = arith.mulf %332, %336 : vector<8x48xf32>
    %338 = vector.broadcast %318 : vector<1x48xf32> to vector<8x48xf32>
    %339 = arith.mulf %337, %338 : vector<8x48xf32>
    %340 = vector.broadcast %319 : vector<1x48xf32> to vector<8x48xf32>
    %341 = arith.addf %339, %340 : vector<8x48xf32>
    %342 = arith.truncf %341 : vector<8x48xf32> to vector<8x48xbf16>
    %c0_114 = arith.constant 0 : index
    %c0_115 = arith.constant 0 : index
    %343 = vector.load %arg15[%c0_114, %c0_115] : memref<48x128xbf16, #tpu.memory_space<vmem>>, vector<48x128xbf16>
    %cst_116 = arith.constant dense<0.000000e+00> : vector<8x128xf32>
    %344 = tpu.matmul %342, %343, %cst_116 {dimension_numbers = #tpu.dot_dimension_numbers<[1], [0], [0], [1], [0, 0, 1, 1], [], []>} : vector<8x48xbf16>, vector<48x128xbf16>, vector<8x128xf32> -> vector<8x128xf32>
    %c0_117 = arith.constant 0 : index
    %c0_118 = arith.constant 0 : index
    %345 = vector.load %arg16[%c0_117, %c0_118] : memref<1x128xf32, #tpu.memory_space<vmem>>, vector<1x128xf32>
    %346 = vector.broadcast %345 : vector<1x128xf32> to vector<8x128xf32>
    %347 = arith.addf %344, %346 : vector<8x128xf32>
    %c0_119 = arith.constant 0 : index
    %c0_120 = arith.constant 0 : index
    %348 = vector.load %arg17[%c0_119, %c0_120] : memref<8x128xf32, #tpu.memory_space<vmem>>, vector<8x128xf32>
    tpu.vector_store %arg17[%c0_119, %c0_120], %347 {strides = array<i32>} : memref<8x128xf32, #tpu.memory_space<vmem>>, vector<8x128xf32>,
    return
  }
  func.func @transform_0(%arg0: i32) -> (i32, i32) {
    %c0_i32 = arith.constant 0 : i32
    %c0_i32_0 = arith.constant 0 : i32
    return %arg0, %c0_i32 : i32, i32
  }
  func.func @transform_1(%arg0: i32) -> (i32, i32, i32) {
    %c0_i32 = arith.constant 0 : i32
    %c0_i32_0 = arith.constant 0 : i32
    %c0_i32_1 = arith.constant 0 : i32
    %c0_i32_2 = arith.constant 0 : i32
    return %c0_i32, %c0_i32_0, %c0_i32_1 : i32, i32, i32
  }
  func.func @transform_2(%arg0: i32) -> (i32, i32, i32) {
    %c0_i32 = arith.constant 0 : i32
    %c0_i32_0 = arith.constant 0 : i32
    %c0_i32_1 = arith.constant 0 : i32
    %c0_i32_2 = arith.constant 0 : i32
    return %c0_i32, %c0_i32_0, %c0_i32_1 : i32, i32, i32
  }
  func.func @transform_3(%arg0: i32) -> (i32, i32, i32) {
    %c0_i32 = arith.constant 0 : i32
    %c0_i32_0 = arith.constant 0 : i32
    %c0_i32_1 = arith.constant 0 : i32
    %c0_i32_2 = arith.constant 0 : i32
    return %c0_i32, %c0_i32_0, %c0_i32_1 : i32, i32, i32
  }
  func.func @transform_4(%arg0: i32) -> (i32, i32, i32) {
    %c0_i32 = arith.constant 0 : i32
    %c0_i32_0 = arith.constant 0 : i32
    %c0_i32_1 = arith.constant 0 : i32
    %c0_i32_2 = arith.constant 0 : i32
    return %c0_i32, %c0_i32_0, %c0_i32_1 : i32, i32, i32
  }
  func.func @transform_5(%arg0: i32) -> (i32, i32, i32) {
    %c0_i32 = arith.constant 0 : i32
    %c0_i32_0 = arith.constant 0 : i32
    %c0_i32_1 = arith.constant 0 : i32
    %c0_i32_2 = arith.constant 0 : i32
    return %c0_i32, %c0_i32_0, %c0_i32_1 : i32, i32, i32
  }
  func.func @transform_6(%arg0: i32) -> (i32, i32, i32) {
    %c0_i32 = arith.constant 0 : i32
    %c0_i32_0 = arith.constant 0 : i32
    %c0_i32_1 = arith.constant 0 : i32
    %c0_i32_2 = arith.constant 0 : i32
    return %c0_i32, %c0_i32_0, %c0_i32_1 : i32, i32, i32
  }
  func.func @transform_7(%arg0: i32) -> (i32, i32, i32) {
    %c0_i32 = arith.constant 0 : i32
    %c0_i32_0 = arith.constant 0 : i32
    %c0_i32_1 = arith.constant 0 : i32
    %c0_i32_2 = arith.constant 0 : i32
    return %c0_i32, %c0_i32_0, %c0_i32_1 : i32, i32, i32
  }
  func.func @transform_8(%arg0: i32) -> (i32, i32, i32) {
    %c0_i32 = arith.constant 0 : i32
    %c0_i32_0 = arith.constant 0 : i32
    %c0_i32_1 = arith.constant 0 : i32
    %c0_i32_2 = arith.constant 0 : i32
    return %c0_i32, %c0_i32_0, %c0_i32_1 : i32, i32, i32
  }
  func.func @transform_9(%arg0: i32) -> (i32, i32, i32) {
    %c0_i32 = arith.constant 0 : i32
    %c0_i32_0 = arith.constant 0 : i32
    %c0_i32_1 = arith.constant 0 : i32
    %c0_i32_2 = arith.constant 0 : i32
    return %c0_i32, %c0_i32_0, %c0_i32_1 : i32, i32, i32
  }
  func.func @transform_10(%arg0: i32) -> (i32, i32, i32) {
    %c0_i32 = arith.constant 0 : i32
    %c0_i32_0 = arith.constant 0 : i32
    %c0_i32_1 = arith.constant 0 : i32
    %c0_i32_2 = arith.constant 0 : i32
    return %c0_i32, %c0_i32_0, %c0_i32_1 : i32, i32, i32
  }
  func.func @transform_11(%arg0: i32) -> (i32, i32, i32) {
    %c0_i32 = arith.constant 0 : i32
    %c0_i32_0 = arith.constant 0 : i32
    %c0_i32_1 = arith.constant 0 : i32
    %c0_i32_2 = arith.constant 0 : i32
    return %c0_i32, %c0_i32_0, %c0_i32_1 : i32, i32, i32
  }
  func.func @transform_12(%arg0: i32) -> (i32, i32) {
    %c0_i32 = arith.constant 0 : i32
    %c0_i32_0 = arith.constant 0 : i32
    %c0_i32_1 = arith.constant 0 : i32
    return %c0_i32, %c0_i32_0 : i32, i32
  }
  func.func @transform_13(%arg0: i32) -> (i32, i32) {
    %c0_i32 = arith.constant 0 : i32
    %c0_i32_0 = arith.constant 0 : i32
    %c0_i32_1 = arith.constant 0 : i32
    return %c0_i32, %c0_i32_0 : i32, i32
  }
  func.func @transform_14(%arg0: i32) -> (i32, i32) {
    %c0_i32 = arith.constant 0 : i32
    %c0_i32_0 = arith.constant 0 : i32
    %c0_i32_1 = arith.constant 0 : i32
    return %c0_i32, %c0_i32_0 : i32, i32
  }
  func.func @transform_15(%arg0: i32) -> (i32, i32) {
    %c0_i32 = arith.constant 0 : i32
    %c0_i32_0 = arith.constant 0 : i32
    %c0_i32_1 = arith.constant 0 : i32
    return %c0_i32, %c0_i32_0 : i32, i32
  }
  func.func @transform_16(%arg0: i32) -> (i32, i32) {
    %c0_i32 = arith.constant 0 : i32
    %c0_i32_0 = arith.constant 0 : i32
    return %arg0, %c0_i32 : i32, i32
  }
}

</mosaic_0001>

<bundles_post_ra>
// kernel: gpt_forward.1
= control target key start
LH: loop header
LB: loop body
LE: loop exit
PB: predicated region body
PF: predicated region fallthrough
CT: control target
= control target key end

     0   :  { %s4026_s21 = smov 0   ;;  %s4616_s0 = inlined_call_operand.vmem [shape: f32[16,48], index: 0, kind: input, shape index: {}]   ;;  %s4617_s1 = inlined_call_operand.vmem [shape: f32[2,1,48], index: 1, kind: input, shape index: {}]   ;;  %s4618_s2 = inlined_call_operand.vmem [shape: f32[2,1,48], index: 2, kind: input, shape index: {}]   ;;  %s4619_s3 = inlined_call_operand.vmem [shape: bf16[2,48,144], index: 3, kind: input, shape index: {}]   ;;  %s4620_s4 = inlined_call_operand.vmem [shape: bf16[2,48,48], index: 4, kind: input, shape index: {}]   ;;  %s4621_s5 = inlined_call_operand.vmem [shape: f32[2,1,48], index: 5, kind: input, shape index: {}]   ;;  %s4622_s6 = inlined_call_operand.vmem [shape: f32[2,1,48], index: 6, kind: input, shape index: {}]   ;;  %s4623_s7 = inlined_call_operand.vmem [shape: f32[2,1,48], index: 7, kind: input, shape index: {}]   ;;  %s4624_s8 = inlined_call_operand.vmem [shape: bf16[2,48,192], index: 8, kind: input, shape index: {}]   ;;  %s4625_s9 = inlined_call_operand.vmem [shape: f32[2,1,192], index: 9, kind: input, shape index: {}]   ;;  %s4626_s10 = inlined_call_operand.vmem [shape: bf16[2,192,48], index: 10, kind: input, shape index: {}]   ;;  %s4627_s11 = inlined_call_operand.vmem [shape: f32[2,1,48], index: 11, kind: input, shape index: {}]   ;;  %s4628_s12 = inlined_call_operand.vmem [shape: f32[1,48], index: 12, kind: input, shape index: {}]   ;;  %s4629_s13 = inlined_call_operand.vmem [shape: f32[1,48], index: 13, kind: input, shape index: {}]   ;;  %s4630_s14 = inlined_call_operand.vmem [shape: bf16[48,128], index: 14, kind: input, shape index: {}]   ;;  %s4631_s15 = inlined_call_operand.vmem [shape: f32[1,128], index: 15, kind: input, shape index: {}]   ;;  %s4632_s16 = inlined_call_operand.vmem [shape: f32[16,128], index: 16, kind: output, shape index: {}]  }
   0x1   :  { %4646 = sst [smem:[#allocation2_spill]] %s4616_s0 }
   0x2 LB: > { %s3371_s22 = sadd.s32 4294967295, %s3924_s21   ;;  %p3375_p0 = scmp.ge.s32.totalorder %s3924_s21, 1  ;;  %s3924_s21 = sphi %s4026_s21, %s26_s21  }
   0x3   : > { %p461_p1 = scmp.lt.s32.totalorder %s3924_s21, 3 }
   0x5   : > { %p462_p2 = pnand %p3375_p0, %p461_p1 }
   0x6   : > { %p509_p3 = scmp.lt.s32.totalorder (!%p462_p2), %s3371_s22, 1  ;;  %vm527_vm0 = vcmask (!%p462_p2), 392192   ;;  %s4647_s26 = sld [smem:[#allocation2_spill]] (!%p462_p2)  ;;  %v3791_v7 = vld [vmem:[%s4619_s3 + $0x4] ss:$8 sps:$4 sm:$0xff] (!%p462_p2)   ;;  %v3926_v11 = vmov (!%p462_p2), 0   ;;  %v519_v49 = vlaneseq (!%p462_p2) }
   0x7   : > { %465 = sbr.rel (%p462_p2) target bundleno = 5522 (0x1592), region = 84  ;;  %v3793_v8 = vld [vmem:[%s4619_s3] ss:$8 sps:$4 sm:$0xff] (!%p462_p2)   ;;  %v3794_v9 = vld [vmem:[%s4619_s3 + $0x14] ss:$8 sps:$4 sm:$0xff] (!%p462_p2)   ;;  %596 = vmatprep.subr.bf16.mxu1 (!%p462_p2), %v3791_v7  ;;  %628 = vmatprep.mubr.bf16.mxu1 (!%p462_p2), %v3926_v11  ;;  %s3927_s17 = smov (!%p462_p2), 104  }
   0x8   : > { %597 = vmatpush1.bf16.msra.mxu1 (!%p462_p2), %v3793_v8  ;;  %v3796_v10 = vld [vmem:[%s4619_s3 + $0x10] ss:$8 sps:$4 sm:$0xff] (!%p462_p2)   ;;  %v3797_v12 = vld [vmem:[%s4619_s3 + $0x24] ss:$8 sps:$4 sm:$0xff] (!%p462_p2)   ;;  %v3799_v13 = vld [vmem:[%s4619_s3 + $0x20] ss:$8 sps:$4 sm:$0xff] (!%p462_p2)  }
   0x9   : > { %598 = vmatprep.subr.bf16.mxu1 (!%p462_p2), %v3794_v9  ;;  %v3378_v18 = vld [vmem:[%s4617_s1] ss:$0 sm:$0xff] (!%p462_p2)  ;;  %s3928_s18 = smov (!%p462_p2), 120   ;;  %v3929_v27 = vmov (!%p462_p2), 0.0   ;;  %s3930_s19 = smov (!%p462_p2), 112   ;;  %vm3931_vm1 = vmmov (!%p462_p2), 0  }
   0xa   : > { %v3379_v20 = vld [vmem:[%s4618_s2] ss:$0 sm:$0xff] (!%p462_p2)  ;;  %3626 = vmatprep.subr.mxu0 (!%p462_p2), %v3929_v27  ;;  %3628 = vmatprep.mubr.msk.f32.mxu0 (!%p462_p2), %vm3931_vm1, %v3929_v27  ;;  %s4644_s20 = smov (!%p462_p2), 96   ;;  %s4642_s24 = smov (!%p462_p2), 88   ;;  %vm660_vm2 = vcmask (!%p462_p2), 64512   ;;  %vm1187_vm3 = vcmask (!%p462_p2), 1043456  }
   0xb   : > { %s4640_s25 = smov (!%p462_p2), 80   ;;  %v4136_v50 = vshrl.u32 (!%p462_p2), %v519_v49, 7  ;;  %v522_v51 = vand.u32 (!%p462_p2), 127, %v519_v49  ;;  %v3936_v52 = vmov (!%p462_p2), -1e+30   ;;  %s4636_s28 = smov (!%p462_p2), 16  }
   0xc   : > { %599 = vmatpush1.bf16.msra.mxu1 (!%p462_p2), %v3796_v10  ;;  %s4635_s29 = smov (!%p462_p2), 24   ;;  %vm1509_vm5 = vcmask (!%p462_p2), 130048   ;;  %vm1511_vm6 = vcmask (!%p462_p2), 195584   ;;  %vm1513_vm7 = vcmask (!%p462_p2), 261120   ;;  %vm1515_vm8 = vcmask (!%p462_p2), 326656   ;;  %s4649_s30 = smov (!%p462_p2), 88  }
   0xd   : > { %600 = vmatprep.subr.bf16.mxu1 (!%p462_p2), %v3797_v12  ;;  %vm523_vm4 = vcmp.le.s32.totalorder (!%p462_p2), %v522_v51, %v4136_v50  ;;  %vm1823_vm9 = vcmask (!%p462_p2), 523264   ;;  %s4650_s0 = smov (!%p462_p2), 80  }
   0xe   : > { %s4658_s22 = smov (!%p509_p3, %s3371_s22), 1  ;;  %v4139_v53 = vsel %vm523_vm4, 0.0, %v3936_v52 }
   0xf   : > { %s4633_s23 = sshll.u32 %s4658_s22, 3 }
  0x10   : > { %s512_s27 = scalar_lea.vmem %s4647_s26, %s4633_s23  ;;  %601 = vmatpush1.bf16.msra.mxu1 %v3799_v13  ;;  %s4638_s26 = smov 32  }
  0x11   : > { %v4042_v0 = vld [vmem:[%s512_s27] sm:$0xff]  ;;  %3606 = vmatprep.subr.mxu1 %v3929_v27  ;;  %s4634_s27 = smov 8   ;;  %s4637_s23 = smov 40  }
  0x12   : > { %v528_v1 = vsel %vm527_vm0, %v4042_v0, 0.0 }
  0x13   : > { %529 = vadd.xlane.f32.xlu0 %v528_v1 }
  0xa0   : > { %v530_v2 = vpop.xlane.xlu0 %529 }
  0xa1   : > { %v532_v3 = vmul.f32 0.020833334, %v530_v2 }
  0xa3   : > { %v533_v4 = vsub.f32 %v4042_v0, %v532_v3 }
  0xa5   : > { %v534_v5 = vmul.f32 %v533_v4, %v533_v4 }
  0xa7   : > { %v535_v6 = vsel %vm527_vm0, %v534_v5, 0.0 }
  0xa8   : > { %536 = vadd.xlane.f32.xlu0 %v535_v6 }
 0x135   : > { %v537_v14 = vpop.xlane.xlu0 %536 }
 0x136   : > { %v538_v15 = vmul.f32 0.020833334, %v537_v14 }
 0x138   : > { %v539_v16 = vadd.f32 1e-05, %v538_v15 }
 0x13a   : > { %3860 = vrsqrt.f32 %v539_v16 }
 0x144   : > { %v3861_v17 = vpop.eup %3860 }
 0x145   : > { %v541_v19 = vmul.f32 %v3861_v17, %v533_v4 }
 0x147   : > { %v548_v21 = vmul.f32 %v3378_v18, %v541_v19 }
 0x149   : > { %v555_v22 = vadd.f32 %v3379_v20, %v548_v21 }
 0x14b   : > { %v556_v23 = vpack.c.bf16 %v555_v22, %v555_v22 }
 0x14d   : > { %3386 = vmatmul.mubr.msk.bf16.vlgmr.msra.gmra.mrb[0].mxu1 %vm527_vm0, %v556_v23 }
 0x14e   : > { %3608 = vmatprep.mubr.msk.f32.mxu1 %vm3931_vm1, %v3929_v27 }
 0x220   : > { %v630_v24 = vpop.f32.mrb[0].mxu1 }
 0x221   : > { %642 = vrot.lane.b32.xlu0 %v630_v24, %s3927_s17  ;;  %638 = vrot.lane.b32.xlu1 %v630_v24, %s3928_s18  ;;  %v632_v25 = vpop.f32.mrb[1].mxu1  ;;  %v1175_v36 = vpack.c.bf16 %v630_v24, %v630_v24 }
 0x222   : > { %v634_v26 = vpop.f32.mrb[2].mxu1 }
 0x223   : > { %v635_v28 = vpop.f32.mrb[3].mxu1 }
 0x225   : > { %640 = vrot.lane.b32.xlu1 %v630_v24, %s3930_s19 }
 0x229   : > { %644 = vrot.lane.b32.xlu1 %v630_v24, %s4644_s20 }
 0x22d   : > { %646 = vrot.lane.b32.xlu1 %v630_v24, %s4642_s24 }
 0x231   : > { %658 = vrot.lane.b32.xlu1 %v630_v24, %s4640_s25 }
 0x293   : > { %v639_v29 = vpop.permute.xlu1 %638  ;;  %v4088_v31 = vpop.permute.xlu0 %642 }
 0x294   : > { %735 = vrot.lane.b32.xlu1 %v639_v29, %s4640_s25  ;;  %v1176_v34 = vpack.c.bf16 %v639_v29, %v639_v29  ;;  %v1178_v14 = vpack.c.bf16 %v4088_v31, %v4088_v31 }
 0x297   : > { %v641_v30 = vpop.permute.xlu1 %640 }
 0x298   : > { %811 = vrot.lane.b32.xlu1 %v641_v30, %s4640_s25  ;;  %v1177_v37 = vpack.c.bf16 %v641_v30, %v641_v30 }
 0x29b   : > { %v645_v32 = vpop.permute.xlu1 %644 }
 0x29c   : > { %887 = vrot.lane.b32.xlu1 %v4088_v31, %s4640_s25  ;;  %963 = vrot.lane.b32.xlu0 %v645_v32, %s4640_s25 }
 0x29f   : > { %v647_v33 = vpop.permute.xlu1 %646 }
 0x2a0   : > { %1039 = vrot.lane.b32.xlu1 %v647_v33, %s4640_s25  ;;  %652 = vrot.lane.b32.xlu0 %v632_v25, %s4644_s20 }
 0x2a3   : > { %v659_v35 = vpop.permute.xlu1 %658 }
 0x2a4   : > { %3607 = vmatpush3.xpose.msk.msra.mxu1 %vm660_vm2, %v659_v35  ;;  %655 = vrot.lane.b32.xlu1 %v632_v25, %s4642_s24 }
 0x2a5   : > { %1232 = vrot.lane.b32.xlu0 %v1176_v34, %s4638_s26  ;;  %3611 = vmatprep.subr.mxu1 %v3929_v27 }
 0x2a7   : > { %3609 = vmatmul.mubr.msk.f32.vlgmr.msra.gmra.mrb[4].mxu1 %vm660_vm2, %v630_v24 }
 0x2a8   : > { %1182 = vrot.lane.b32.xlu1 %v1175_v36, %s4638_s26  ;;  %3613 = vmatprep.mubr.msk.f32.mxu1 %vm3931_vm1, %v3929_v27 }
 0x2ac   : > { %1281 = vrot.lane.b32.xlu1 %v1177_v37, %s4638_s26 }
 0x306   : > { %v736_v38 = vpop.permute.xlu1 %735 }
 0x307   : > { %3612 = vmatpush3.xpose.msk.msra.mxu1 %vm660_vm2, %v736_v38 }
 0x308   : > { %3616 = vmatprep.subr.mxu1 %v3929_v27 }
 0x30a   : > { %3614 = vmatmul.mubr.msk.f32.vlgmr.msra.gmra.mrb[6].mxu1 %vm660_vm2, %v639_v29  ;;  %v812_v39 = vpop.permute.xlu1 %811 }
 0x30b   : > { %3617 = vmatpush3.xpose.msk.msra.mxu1 %vm660_vm2, %v812_v39  ;;  %3618 = vmatprep.mubr.msk.f32.mxu1 %vm3931_vm1, %v3929_v27 }
 0x30c   : > { %3621 = vmatprep.subr.mxu1 %v3929_v27 }
 0x30e   : > { %v964_v40 = vpop.permute.xlu0 %963  ;;  %3619 = vmatmul.mubr.msk.f32.vlgmr.msra.gmra.mrb[8].mxu1 %vm660_vm2, %v641_v30  ;;  %v888_v41 = vpop.permute.xlu1 %887 }
 0x30f   : > { %3622 = vmatpush3.xpose.msk.msra.mxu1 %vm660_vm2, %v888_v41  ;;  %3627 = vmatpush3.xpose.msk.msra.mxu0 %vm660_vm2, %v964_v40 }
 0x310   : > { %3623 = vmatprep.mubr.msk.f32.mxu1 %vm3931_vm1, %v3929_v27  ;;  %3631 = vmatprep.subr.mxu1 %v3929_v27 }
 0x311   : > { %3636 = vmatprep.subr.bf16.mxu0 %v3929_v27 }
 0x312   : > { %3624 = vmatmul.mubr.msk.f32.vlgmr.msra.gmra.mrb[10].mxu1 %vm660_vm2, %v4088_v31  ;;  %3629 = vmatmul.mubr.msk.f32.vlgmr.msra.gmra.mrb[0].mxu0 %vm660_vm2, %v645_v32  ;;  %v1040_v42 = vpop.permute.xlu1 %1039  ;;  %v653_v43 = vpop.permute.xlu0 %652 }
 0x313   : > { %3632 = vmatpush3.xpose.msk.msra.mxu1 %vm660_vm2, %v1040_v42  ;;  %3633 = vmatprep.mubr.msk.f32.mxu1 %vm3931_vm1, %v3929_v27  ;;  %v1179_v15 = vpack.c.bf16 %v653_v43, %v653_v43 }
 0x314   : > { %3642 = vmatprep.subr.bf16.mxu1 %v3929_v27  ;;  %3638 = vmatprep.mubr.msk.bf16.mxu0 %vm3931_vm1, %v3929_v27 }
 0x316   : > { %3634 = vmatmul.mubr.msk.f32.vlgmr.msra.gmra.mrb[12].mxu1 %vm660_vm2, %v647_v33  ;;  %v4128_v44 = vpop.permute.xlu1 %655 }
 0x317   : > { %v1233_v45 = vpop.permute.xlu0 %1232  ;;  %3644 = vmatprep.mubr.msk.bf16.mxu1 %vm3931_vm1, %v3929_v27  ;;  %v1180_v25 = vpack.c.bf16 %v4128_v44, %v4128_v44 }
 0x318   : > { %v1238_v46 = vsel %vm1187_vm3, %v1233_v45, 0 }
 0x319   : > { %3643 = vmatpush3.bf16.msra.mxu1 %v1238_v46 }
 0x31a   : > { %v1183_v47 = vpop.permute.xlu1 %1182  ;;  %3654 = vmatprep.subr.bf16.mxu1 %v3929_v27 }
 0x31b   : > { %v1189_v48 = vsel %vm1187_vm3, %v1183_v47, 0 }
 0x31c   : > { %3637 = vmatpush3.bf16.msra.mxu0 %v1189_v48 }
 0x31d   : > { %3648 = vmatprep.subr.bf16.mxu0 %v3929_v27 }
 0x31e   : > { %v1282_v22 = vpop.permute.xlu1 %1281 }
 0x31f   : > { %v1287_v24 = vsel %vm1187_vm3, %v1282_v22, 0 }
 0x37a   : > { %v731_v54 = vpop.f32.mrb[4].mxu1 }
 0x37b   : > { %v732_v55 = vadd.f32 %v731_v54, %v4139_v53  ;;  %v3610_v56 = vpop.f32.mrb[5].mxu1 }
 0x37d   : > { %v1115_v57 = vsel %vm660_vm2, %v732_v55, -inf }
 0x37e   : > { %1116 = vmax.xlane.f32.xlu0 %v1115_v57 }
 0x3dd   : > { %v807_v58 = vpop.f32.mrb[6].mxu1 }
 0x3de   : > { %v808_v59 = vadd.f32 %v807_v58, %v4139_v53  ;;  %v3615_v60 = vpop.f32.mrb[7].mxu1 }
 0x3e0   : > { %v1118_v61 = vsel %vm660_vm2, %v808_v59, -inf }
 0x3e1   : > { %1119 = vmax.xlane.f32.xlu1 %v1118_v61  ;;  %v883_v62 = vpop.f32.mrb[8].mxu1 }
 0x3e2   : > { %v884_v63 = vadd.f32 %v883_v62, %v4139_v53  ;;  %v3620_v1 = vpop.f32.mrb[9].mxu1 }
 0x3e4   : > { %v1121_v2 = vsel %vm660_vm2, %v884_v63, -inf }
 0x3e5   : > { %v1035_v3 = vpop.f32.mrb[0].mxu0  ;;  %1122 = vmax.xlane.f32.xlu0 %v1121_v2  ;;  %v959_v4 = vpop.f32.mrb[10].mxu1 }
 0x3e6   : > { %v960_v5 = vadd.f32 %v959_v4, %v4139_v53  ;;  %v3625_v6 = vpop.f32.mrb[11].mxu1  ;;  %v3630_v7 = vpop.f32.mrb[1].mxu0  ;;  %v1036_v19 = vadd.f32 %v1035_v3, %v4139_v53 }
 0x3e8   : > { %v1124_v8 = vsel %vm660_vm2, %v960_v5, -inf  ;;  %v1127_v20 = vsel %vm660_vm2, %v1036_v19, -inf }
 0x3e9   : > { %1125 = vmax.xlane.f32.xlu0 %v1124_v8  ;;  %v1111_v9 = vpop.f32.mrb[12].mxu1 }
 0x3ea   : > { %v1112_v10 = vadd.f32 %v1111_v9, %v4139_v53  ;;  %v3635_v12 = vpop.f32.mrb[13].mxu1 }
 0x3ec   : > { %v1130_v13 = vsel %vm660_vm2, %v1112_v10, -inf }
 0x3ed   : > { %1131 = vmax.xlane.f32.xlu0 %v1130_v13 }
 0x3f2   : > { %1330 = vrot.lane.b32.xlu1 %v1178_v14, %s4638_s26 }
 0x403   : > { %1379 = vrot.lane.b32.xlu0 %v1179_v15, %s4638_s26 }
 0x40b   : > { %v1117_v16 = vpop.xlane.xlu0 %1116 }
 0x40c   : > { %v1133_v17 = vsub.f32 %v732_v55, %v1117_v16 }
 0x40e   : > { %v1139_v18 = vmul.f32 1.442695, %v1133_v17 }
 0x410   : > { %3862 = vpow2.f32 %v1139_v18 }
 0x416   : > { %1128 = vmax.xlane.f32.xlu1 %v1127_v20 }
 0x41a   : > { %v4157_v21 = vpop.eup %3862 }
 0x41b   : > { %v1169_v23 = vpack.c.bf16 %v4157_v21, %v4157_v21  ;;  %v1151_v2 = vsel %vm660_vm2, %v4157_v21, 0.0 }
 0x41d   : > { %3639 = vmatmul.mubr.msk.bf16.vlgmr.msra.gmra.mrb[4].mxu0 %vm660_vm2, %v1169_v23 }
 0x41e   : > { %3649 = vmatpush3.bf16.msra.mxu0 %v1287_v24  ;;  %3650 = vmatprep.mubr.msk.bf16.mxu0 %vm3931_vm1, %v3929_v27 }
 0x41f   : > { %3660 = vmatprep.subr.bf16.mxu0 %v3929_v27 }
 0x427   : > { %1428 = vrot.lane.b32.xlu1 %v1180_v25, %s4638_s26 }
 0x46e   : > { %v1120_v26 = vpop.xlane.xlu1 %1119 }
 0x46f   : > { %v1134_v28 = vsub.f32 %v808_v59, %v1120_v26 }
 0x471   : > { %v1141_v29 = vmul.f32 1.442695, %v1134_v28 }
 0x472   : > { %v1123_v30 = vpop.xlane.xlu0 %1122  ;;  %v1331_v39 = vpop.permute.xlu1 %1330 }
 0x473   : > { %3864 = vpow2.f32 %v1141_v29  ;;  %v1135_v31 = vsub.f32 %v884_v63, %v1123_v30  ;;  %v1336_v43 = vsel %vm1187_vm3, %v1331_v39, 0 }
 0x475   : > { %v1143_v32 = vmul.f32 1.442695, %v1135_v31  ;;  %v3800_v31 = vld [vmem:[%s4620_s4] sm:$0xff]  }
 0x476   : > { %v1126_v33 = vpop.xlane.xlu0 %1125 }
 0x477   : > { %3866 = vpow2.f32 %v1143_v32  ;;  %v1136_v34 = vsub.f32 %v960_v5, %v1126_v33  ;;  %v3801_v32 = vld [vmem:[%s4620_s4 + $0x8] sm:$0xff]  }
 0x479   : > { %v1145_v35 = vmul.f32 1.442695, %v1136_v34  ;;  %v3802_v34 = vld [vmem:[%s4620_s4 + $0x10] sm:$0xff]  }
 0x47a   : > { %v1132_v36 = vpop.xlane.xlu0 %1131 }
 0x47b   : > { %3868 = vpow2.f32 %v1145_v35  ;;  %v1138_v37 = vsub.f32 %v1112_v10, %v1132_v36 }
 0x47d   : > { %v3865_v38 = vpop.eup %3864  ;;  %v1149_v40 = vmul.f32 1.442695, %v1138_v37 }
 0x47e   : > { %v1154_v41 = vsel %vm660_vm2, %v3865_v38, 0.0  ;;  %v1170_v42 = vpack.c.bf16 %v3865_v38, %v3865_v38  ;;  %v1380_v45 = vpop.permute.xlu0 %1379 }
 0x47f   : > { %3870 = vpow2.f32 %v1149_v40  ;;  %1155 = vadd.xlane.f32.xlu0 %v1154_v41  ;;  %v1385_v48 = vsel %vm1187_vm3, %v1380_v45, 0 }
 0x480   : > { %3645 = vmatmul.mubr.msk.bf16.vlgmr.msra.gmra.mrb[16].mxu1 %vm660_vm2, %v1170_v42 }
 0x481   : > { %v3867_v44 = vpop.eup %3866  ;;  %3655 = vmatpush3.bf16.msra.mxu1 %v1336_v43  ;;  %3656 = vmatprep.mubr.msk.bf16.mxu1 %vm3931_vm1, %v3929_v27 }
 0x482   : > { %v1157_v46 = vsel %vm660_vm2, %v3867_v44, 0.0  ;;  %v1171_v47 = vpack.c.bf16 %v3867_v44, %v3867_v44  ;;  %3666 = vmatprep.subr.bf16.mxu1 %v3929_v27 }
 0x483   : > { %1158 = vadd.xlane.f32.xlu1 %v1157_v46 }
 0x484   : > { %3651 = vmatmul.mubr.msk.bf16.vlgmr.msra.gmra.mrb[8].mxu0 %vm660_vm2, %v1171_v47 }
 0x485   : > { %v3869_v49 = vpop.eup %3868  ;;  %3661 = vmatpush3.bf16.msra.mxu0 %v1385_v48  ;;  %3662 = vmatprep.mubr.msk.bf16.mxu0 %vm3931_vm1, %v3929_v27 }
 0x486   : > { %v1160_v51 = vsel %vm660_vm2, %v3869_v49, 0.0  ;;  %v1172_v52 = vpack.c.bf16 %v3869_v49, %v3869_v49  ;;  %3672 = vmatprep.subr.bf16.mxu0 %v3929_v27 }
 0x487   : > { %1161 = vadd.xlane.f32.xlu0 %v1160_v51 }
 0x488   : > { %3657 = vmatmul.mubr.msk.bf16.vlgmr.msra.gmra.mrb[20].mxu1 %vm660_vm2, %v1172_v52 }
 0x489   : > { %v3871_v54 = vpop.eup %3870  ;;  %3668 = vmatprep.mubr.msk.bf16.mxu1 %vm3931_vm1, %v3929_v27 }
 0x48a   : > { %v1166_v55 = vsel %vm660_vm2, %v3871_v54, 0.0  ;;  %v1174_v61 = vpack.c.bf16 %v3871_v54, %v3871_v54 }
 0x48b   : > { %1167 = vadd.xlane.f32.xlu1 %v1166_v55 }
 0x4a3   : > { %v1129_v56 = vpop.xlane.xlu1 %1128 }
 0x4a4   : > { %v1137_v57 = vsub.f32 %v1036_v19, %v1129_v56 }
 0x4a6   : > { %v1147_v58 = vmul.f32 1.442695, %v1137_v57 }
 0x4a7   : > { %v1429_v59 = vpop.permute.xlu1 %1428 }
 0x4a8   : > { %3872 = vpow2.f32 %v1147_v58  ;;  %v1434_v60 = vsel %vm1187_vm3, %v1429_v59, 0 }
 0x4a9   : > { %3667 = vmatpush3.bf16.msra.mxu1 %v1434_v60 }
 0x4ac   : > { %3669 = vmatmul.mubr.msk.bf16.vlgmr.msra.gmra.mrb[24].mxu1 %vm660_vm2, %v1174_v61 }
 0x4ad   : > { %1707 = vmatprep.mubr.bf16.mxu1 %v3926_v11 }
 0x4b2   : > { %v3873_v62 = vpop.eup %3872 }
 0x4b3   : > { %v1163_v63 = vsel %vm660_vm2, %v3873_v62, 0.0  ;;  %v1173_v1 = vpack.c.bf16 %v3873_v62, %v3873_v62 }
 0x4b4   : > { %1164 = vadd.xlane.f32.xlu0 %v1163_v63 }
 0x4b5   : > { %3663 = vmatmul.mubr.msk.bf16.vlgmr.msra.gmra.mrb[12].mxu0 %vm660_vm2, %v1173_v1  ;;  %v3409_v1 = vld [vmem:[%s4621_s5] ss:$0 sm:$0xff] }
 0x4b6   : > { %3678 = vmatprep.mubr.msk.bf16.mxu0 %vm3931_vm1, %v3929_v27  ;;  %3673 = vmatpush3.bf16.msra.mxu0 %v3800_v31 }
 0x4b7   : > { %3674 = vmatprep.subr.bf16.mxu0 %v3929_v27 }
 0x4b8   : > { %1152 = vadd.xlane.f32.xlu0 %v1151_v2 }
 0x4ba   : > { %3675 = vmatpush3.bf16.msra.mxu0 %v3801_v32 }
 0x4bb   : > { %3676 = vmatprep.subr.bf16.mxu0 %v3929_v27 }
 0x4be   : > { %3677 = vmatpush3.bf16.msra.mxu0 %v3802_v34  ;;  %v3410_v34 = vld [vmem:[%s4622_s6] ss:$0 sm:$0xff] }
 0x4bf   : > { %1827 = vmatprep.subr.bf16.mxu0 %v3926_v11 }
 0x4f0   : > { %v4195_v3 = vpop.f32.mrb[4].mxu0 }
 0x4f1   : > { %v3640_v4 = vpop.f32.mrb[5].mxu0 }
 0x4f2   : > { %v1228_v5 = vpop.f32.mrb[6].mxu0 }
 0x4f3   : > { %v3641_v6 = vpop.f32.mrb[7].mxu0 }
 0x50c   : > { %v1156_v7 = vpop.xlane.xlu0 %1155 }
 0x50d   : > { %3874 = vrcp.f32 %v1156_v7 }
 0x510   : > { %v1159_v8 = vpop.xlane.xlu1 %1158 }
 0x511   : > { %3876 = vrcp.f32 %v1159_v8 }
 0x514   : > { %v1162_v9 = vpop.xlane.xlu0 %1161 }
 0x515   : > { %3878 = vrcp.f32 %v1162_v9 }
 0x517   : > { %v3875_v10 = vpop.eup %3874 }
 0x518   : > { %v1168_v30 = vpop.xlane.xlu1 %1167 }
 0x519   : > { %3880 = vrcp.f32 %v1168_v30 }
 0x51b   : > { %v3877_v17 = vpop.eup %3876 }
 0x51f   : > { %v3879_v23 = vpop.eup %3878 }
 0x523   : > { %v3881_v35 = vpop.eup %3880 }
 0x541   : > { %v1165_v33 = vpop.xlane.xlu0 %1164 }
 0x542   : > { %3882 = vrcp.f32 %v1165_v33 }
 0x545   : > { %v1153_v47 = vpop.xlane.xlu0 %1152 }
 0x546   : > { %3884 = vrcp.f32 %v1153_v47 }
 0x54c   : > { %v3883_v41 = vpop.eup %3882 }
 0x550   : > { %v3885_v49 = vpop.eup %3884 }
 0x551   : > { %v1482_v51 = vmul.f32 %v3885_v49, %v4195_v3 }
 0x553   : > { %v1274_v12 = vpop.f32.mrb[16].mxu1 }
 0x554   : > { %v1483_v13 = vmul.f32 %v3875_v10, %v1274_v12  ;;  %v3646_v14 = vpop.f32.mrb[17].mxu1 }
 0x555   : > { %v1277_v15 = vpop.f32.mrb[18].mxu1  ;;  %v3803_v14 = vld [vmem:[%s4624_s8] ss:$8 sps:$4 sm:$0xff]  }
 0x556   : > { %1489 = vrot.lane.b32.xlu1 %v1483_v13, %s4634_s27  ;;  %v3647_v16 = vpop.f32.mrb[19].mxu1  ;;  %v3808_v15 = vld [vmem:[%s4624_s8 + $0x14] ss:$8 sps:$4 sm:$0xff]   ;;  %s4654_s27 = smov 24  }
 0x557   : > { %v1323_v18 = vpop.f32.mrb[8].mxu0  ;;  %v3806_v16 = vld [vmem:[%s4624_s8 + $0x10] ss:$8 sps:$4 sm:$0xff]  }
 0x558   : > { %v1484_v19 = vmul.f32 %v3877_v17, %v1323_v18  ;;  %v3652_v20 = vpop.f32.mrb[9].mxu0  ;;  %v3811_v17 = vld [vmem:[%s4624_s8 + $0x24] ss:$8 sps:$4 sm:$0xff]   ;;  %v3809_v18 = vld [vmem:[%s4624_s8 + $0x20] ss:$8 sps:$4 sm:$0xff]  }
 0x559   : > { %v1326_v21 = vpop.f32.mrb[10].mxu0  ;;  %v3813_v20 = vld [vmem:[%s4626_s10 + $0x8] sm:$0xff]  }
 0x55a   : > { %v3653_v22 = vpop.f32.mrb[11].mxu0  ;;  %1493 = vrot.lane.b32.xlu0 %v1484_v19, %s4636_s28  ;;  %v3812_v19 = vld [vmem:[%s4626_s10] sm:$0xff]   ;;  %v3814_v21 = vld [vmem:[%s4626_s10 + $0x10] sm:$0xff]  }
 0x55b   : > { %v1372_v24 = vpop.f32.mrb[20].mxu1  ;;  %v3815_v22 = vld [vmem:[%s4626_s10 + $0x18] sm:$0xff]  }
 0x55c   : > { %v1485_v25 = vmul.f32 %v3879_v23, %v1372_v24  ;;  %v3658_v26 = vpop.f32.mrb[21].mxu1  ;;  %v3816_v23 = vld [vmem:[%s4626_s10 + $0x20] sm:$0xff]   ;;  %v3817_v24 = vld [vmem:[%s4626_s10 + $0x28] sm:$0xff]  }
 0x55d   : > { %v1375_v28 = vpop.f32.mrb[22].mxu1  ;;  %v3819_v26 = vld [vmem:[%s4626_s10 + $0x38] sm:$0xff]  }
 0x55e   : > { %1497 = vrot.lane.b32.xlu1 %v1485_v25, %s4635_s29  ;;  %v3659_v29 = vpop.f32.mrb[23].mxu1  ;;  %v3818_v25 = vld [vmem:[%s4626_s10 + $0x30] sm:$0xff]   ;;  %v3820_v28 = vld [vmem:[%s4626_s10 + $0x40] sm:$0xff]   ;;  %s4648_s29 = smov 96  }
 0x55f   : > { %v3821_v29 = vld [vmem:[%s4626_s10 + $0x48] sm:$0xff]  }
 0x57f   : > { %v1470_v36 = vpop.f32.mrb[24].mxu1 }
 0x580   : > { %v1487_v37 = vmul.f32 %v3881_v35, %v1470_v36  ;;  %v3670_v38 = vpop.f32.mrb[25].mxu1  ;;  %v3411_v36 = vld [vmem:[%s4623_s7] ss:$0 sm:$0xff] }
 0x581   : > { %v1473_v39 = vpop.f32.mrb[26].mxu1 }
 0x582   : > { %1505 = vrot.lane.b32.xlu0 %v1487_v37, %s4637_s23  ;;  %v3671_v40 = vpop.f32.mrb[27].mxu1  ;;  %s4656_s23 = sshll.u32 %s4658_s22, 3 }
 0x583   : > { %v3822_v40 = vld [vmem:[%s4626_s10 + $0x50] sm:$0xff]   ;;  %s516_s24 = scalar_lea.vmem %s4632_s16, %s4656_s23 }
 0x588   : > { %v1421_v42 = vpop.f32.mrb[12].mxu0 }
 0x589   : > { %v1486_v43 = vmul.f32 %v3883_v41, %v1421_v42  ;;  %v3664_v44 = vpop.f32.mrb[13].mxu0  ;;  %v3823_v41 = vld [vmem:[%s4626_s10 + $0x58] sm:$0xff]   ;;  %v1634_v42 = vsub.s32 0, %v4136_v50 }
 0x58a   : > { %v1424_v45 = vpop.f32.mrb[14].mxu0  ;;  %v1638_v44 = vsub.s32 1, %v4136_v50 }
 0x58b   : > { %v3665_v46 = vpop.f32.mrb[15].mxu0  ;;  %1501 = vrot.lane.b32.xlu1 %v1486_v43, %s4638_s26  ;;  %v1630_v43 = vld [vmem:[%s4625_s9] sm:$0x3] }
 0x58c   : > { %v1635_v45 = vrot.slane %v1630_v43, %v1634_v42  ;;  %v1639_v46 = vrot.slane %v1630_v43, %v1638_v44 }
 0x5c8   : > { %v1490_v48 = vpop.permute.xlu1 %1489 }
 0x5c9   : > { %v1508_v55 = vsel %vm660_vm2, %v1482_v51, %v1490_v48 }
 0x5cc   : > { %v1494_v52 = vpop.permute.xlu0 %1493 }
 0x5cd   : > { %v1510_v56 = vsel %vm1509_vm5, %v1508_v55, %v1494_v52 }
 0x5d0   : > { %v1498_v54 = vpop.permute.xlu1 %1497 }
 0x5d1   : > { %v1512_v57 = vsel %vm1511_vm6, %v1510_v56, %v1498_v54 }
 0x5f4   : > { %v1506_v59 = vpop.permute.xlu0 %1505 }
 0x5fd   : > { %v1502_v58 = vpop.permute.xlu1 %1501 }
 0x5fe   : > { %v1514_v60 = vsel %vm1513_vm7, %v1512_v57, %v1502_v58 }
 0x5ff   : > { %v1516_v61 = vsel %vm1515_vm8, %v1514_v60, %v1506_v59  ;;  %v3419_v59 = vld [vmem:[%s4627_s11] ss:$0 sm:$0xff] }
 0x600   : > { %v1517_v62 = vpack.c.bf16 %v1516_v61, %v1516_v61 }
 0x602   : > { %3679 = vmatmul.mubr.msk.bf16.vlgmr.msra.gmra.mrb[16].mxu0 %vm527_vm0, %v1517_v62 }
 0x603   : > { %1828 = vmatpush1.bf16.msra.mxu0 %v3812_v19  ;;  %v3435_v19 = vld [vmem:[%s4617_s1 + $0x1] ss:$0 sm:$0xff] }
 0x604   : > { %1829 = vmatprep.subr.bf16.mxu0 %v3926_v11 }
 0x607   : > { %1830 = vmatpush1.bf16.msra.mxu0 %v3813_v20 }
 0x608   : > { %1831 = vmatprep.subr.bf16.mxu0 %v3926_v11 }
 0x60b   : > { %1832 = vmatpush1.bf16.msra.mxu0 %v3814_v21  ;;  %v3436_v21 = vld [vmem:[%s4618_s2 + $0x1] ss:$0 sm:$0xff] }
 0x60c   : > { %1833 = vmatprep.subr.bf16.mxu0 %v3926_v11 }
 0x60f   : > { %1834 = vmatpush1.bf16.msra.mxu0 %v3815_v22 }
 0x610   : > { %1835 = vmatprep.subr.bf16.mxu0 %v3926_v11 }
 0x613   : > { %1836 = vmatpush1.bf16.msra.mxu0 %v3816_v23 }
 0x614   : > { %1837 = vmatprep.subr.bf16.mxu0 %v3926_v11 }
 0x617   : > { %1838 = vmatpush1.bf16.msra.mxu0 %v3817_v24 }
 0x618   : > { %1839 = vmatprep.subr.bf16.mxu0 %v3926_v11 }
 0x61b   : > { %1840 = vmatpush1.bf16.msra.mxu0 %v3818_v25 }
 0x61c   : > { %1841 = vmatprep.subr.bf16.mxu0 %v3926_v11 }
 0x61f   : > { %1842 = vmatpush1.bf16.msra.mxu0 %v3819_v26 }
 0x620   : > { %1843 = vmatprep.subr.bf16.mxu0 %v3926_v11 }
 0x623   : > { %1844 = vmatpush1.bf16.msra.mxu0 %v3820_v28 }
 0x624   : > { %1845 = vmatprep.subr.bf16.mxu0 %v3926_v11 }
 0x627   : > { %1846 = vmatpush1.bf16.msra.mxu0 %v3821_v29 }
 0x628   : > { %1847 = vmatprep.subr.bf16.mxu0 %v3926_v11 }
 0x62b   : > { %1848 = vmatpush1.bf16.msra.mxu0 %v3822_v40 }
 0x62c   : > { %1849 = vmatprep.subr.bf16.mxu0 %v3926_v11 }
 0x62f   : > { %1850 = vmatpush1.bf16.msra.mxu0 %v3823_v41 }
 0x630   : > { %3724 = vmatprep.subr.bf16.mxu0 %v3929_v27 }
 0x6d5   : > { %v1579_v63 = vpop.f32.mrb[16].mxu0 }
 0x6d6   : > { %v1585_v2 = vadd.f32 %v1579_v63, %v4042_v0  ;;  %v3680_v3 = vpop.f32.mrb[17].mxu0  ;;  %v3805_v0 = vld [vmem:[%s4624_s8 + $0x4] ss:$8 sps:$4 sm:$0xff]  }
 0x6d7   : > { %v1582_v4 = vpop.f32.mrb[18].mxu0  ;;  %1675 = vmatprep.subr.bf16.mxu1 %v3805_v0  ;;  %v3832_v0 = vld [vmem:[%s4619_s3 + $0x54] ss:$8 sps:$4 sm:$0xff]  }
 0x6d8   : > { %v4225_v5 = vadd.f32 %v3409_v1, %v1585_v2  ;;  %v3681_v6 = vpop.f32.mrb[19].mxu0  ;;  %1676 = vmatpush1.bf16.msra.mxu1 %v3803_v14  ;;  %v3830_v14 = vld [vmem:[%s4619_s3 + $0x50] ss:$8 sps:$4 sm:$0xff]  }
 0x6d9   : > { %1677 = vmatprep.subr.bf16.mxu1 %v3808_v15 }
 0x6da   : > { %v1596_v7 = vsel %vm527_vm0, %v4225_v5, 0.0 }
 0x6db   : > { %1597 = vadd.xlane.f32.xlu1 %v1596_v7 }
 0x6dc   : > { %1678 = vmatpush1.bf16.msra.mxu1 %v3806_v16 }
 0x6dd   : > { %1679 = vmatprep.subr.bf16.mxu1 %v3811_v17 }
 0x6e0   : > { %1680 = vmatpush1.bf16.msra.mxu1 %v3809_v18 }
 0x768   : > { %v1598_v8 = vpop.xlane.xlu1 %1597 }
 0x769   : > { %v1599_v9 = vmul.f32 0.020833334, %v1598_v8 }
 0x76b   : > { %v1600_v10 = vsub.f32 %v4225_v5, %v1599_v9 }
 0x76d   : > { %v1601_v12 = vmul.f32 %v1600_v10, %v1600_v10 }
 0x76f   : > { %v1602_v13 = vsel %vm527_vm0, %v1601_v12, 0.0  ;;  %v3829_v12 = vld [vmem:[%s4619_s3 + $0x44] ss:$8 sps:$4 sm:$0xff]  }
 0x770   : > { %1603 = vadd.xlane.f32.xlu0 %v1602_v13  ;;  %v3827_v13 = vld [vmem:[%s4619_s3 + $0x40] ss:$8 sps:$4 sm:$0xff]  }
 0x7fd   : > { %v1604_v30 = vpop.xlane.xlu0 %1603 }
 0x7fe   : > { %v1605_v31 = vmul.f32 0.020833334, %v1604_v30 }
 0x800   : > { %v1606_v32 = vadd.f32 1e-05, %v1605_v31 }
 0x802   : > { %3886 = vrsqrt.f32 %v1606_v32 }
 0x80c   : > { %v3887_v33 = vpop.eup %3886 }
 0x80d   : > { %v1608_v35 = vmul.f32 %v3887_v33, %v1600_v10  ;;  %v3826_v10 = vld [vmem:[%s4619_s3 + $0x34] ss:$8 sps:$4 sm:$0xff]  }
 0x80e   : > { %1940 = vmatprep.subr.bf16.mxu1 %v3826_v10 }
 0x80f   : > { %v1615_v37 = vmul.f32 %v3410_v34, %v1608_v35 }
 0x811   : > { %v1622_v38 = vadd.f32 %v3411_v36, %v1615_v37 }
 0x813   : > { %v1623_v39 = vpack.c.bf16 %v1622_v38, %v1622_v38 }
 0x815   : > { %3418 = vmatmul.mubr.msk.bf16.vlgmr.msra.gmra.mrb[28].mxu1 %vm527_vm0, %v1623_v39 }
 0x816   : > { %1972 = vmatprep.mubr.bf16.mxu1 %v3926_v11 }
 0x8e8   : > { %v1709_v47 = vpop.f32.mrb[28].mxu1 }
 0x8e9   : > { %v1710_v48 = vadd.f32 %v1709_v47, %v1635_v45  ;;  %v1711_v49 = vpop.f32.mrb[29].mxu1 }
 0x8ea   : > { %v1712_v51 = vadd.f32 %v1711_v49, %v1639_v46  ;;  %v1713_v52 = vpop.f32.mrb[30].mxu1 }
 0x8eb   : > { %v1716_v54 = vmax.f32 %v1710_v48, 0.0  ;;  %v1714_v55 = vpop.f32.mrb[31].mxu1 }
 0x8ec   : > { %v1717_v56 = vmax.f32 %v1712_v51, 0.0 }
 0x8ed   : > { %v1718_v58 = vpack.c.bf16 %v1716_v54, %v1716_v54 }
 0x8ee   : > { %v1719_v57 = vpack.c.bf16 %v1717_v56, %v1717_v56 }
 0x8f0   : > { %3432 = vmatprep.mubr.msk.bf16.mxu0 %vm1823_vm9, %v1719_v57 }
 0x8f1   : > { %1860 = vmatmul.mubr.bf16.vlgmr.msra.gmra.mrb[20].mxu0 %v1718_v58 }
 0x8f2   : > { %3726 = vmatprep.mubr.msk.bf16.mxu0 %vm3931_vm1, %v3929_v27 }
 0x9c4   : > { %v1861_v60 = vpop.f32.mrb[20].mxu0 }
 0x9c5   : > { %v1862_v61 = vadd.f32 %v3419_v59, %v1861_v60  ;;  %v1863_v62 = vpop.f32.mrb[21].mxu0 }
 0x9c6   : > { %v1864_v63 = vpop.f32.mrb[22].mxu0 }
 0x9c7   : > { %v4321_v1 = vadd.f32 %v1862_v61, %v4225_v5  ;;  %v1865_v2 = vpop.f32.mrb[23].mxu0  ;;  %v3824_v5 = vld [vmem:[%s4619_s3 + $0x30] ss:$8 sps:$4 sm:$0xff]  }
 0x9c8   : > { %1941 = vmatpush1.bf16.msra.mxu1 %v3824_v5 }
 0x9c9   : > { %v1872_v3 = vsel %vm527_vm0, %v4321_v1, 0.0  ;;  %1942 = vmatprep.subr.bf16.mxu1 %v3829_v12 }
 0x9ca   : > { %1873 = vadd.xlane.f32.xlu0 %v1872_v3 }
 0x9cc   : > { %1943 = vmatpush1.bf16.msra.mxu1 %v3827_v13 }
 0x9cd   : > { %1944 = vmatprep.subr.bf16.mxu1 %v3832_v0 }
 0x9d0   : > { %1945 = vmatpush1.bf16.msra.mxu1 %v3830_v14 }
 0x9d1   : > { %3682 = vmatprep.subr.mxu1 %v3929_v27 }
 0xa57   : > { %v1874_v4 = vpop.xlane.xlu0 %1873 }
 0xa58   : > { %v1875_v6 = vmul.f32 0.020833334, %v1874_v4 }
 0xa5a   : > { %v1876_v7 = vsub.f32 %v4321_v1, %v1875_v6 }
 0xa5c   : > { %v1877_v8 = vmul.f32 %v1876_v7, %v1876_v7 }
 0xa5e   : > { %v1878_v9 = vsel %vm527_vm0, %v1877_v8, 0.0 }
 0xa5f   : > { %1879 = vadd.xlane.f32.xlu1 %v1878_v9 }
 0xaec   : > { %v1880_v15 = vpop.xlane.xlu1 %1879 }
 0xaed   : > { %v1881_v16 = vmul.f32 0.020833334, %v1880_v15 }
 0xaef   : > { %v1882_v17 = vadd.f32 1e-05, %v1881_v16 }
 0xaf1   : > { %3888 = vrsqrt.f32 %v1882_v17 }
 0xafb   : > { %v3889_v18 = vpop.eup %3888 }
 0xafc   : > { %v1884_v20 = vmul.f32 %v3889_v18, %v1876_v7 }
 0xafe   : > { %v1891_v22 = vmul.f32 %v3435_v19, %v1884_v20 }
 0xb00   : > { %v1898_v23 = vadd.f32 %v3436_v21, %v1891_v22 }
 0xb02   : > { %v1899_v24 = vpack.c.bf16 %v1898_v23, %v1898_v23 }
 0xb04   : > { %3449 = vmatmul.mubr.msk.bf16.vlgmr.msra.gmra.mrb[32].mxu1 %vm527_vm0, %v1899_v24 }
 0xb05   : > { %3684 = vmatprep.mubr.msk.f32.mxu1 %vm3931_vm1, %v3929_v27 }
 0xbd7   : > { %v1974_v25 = vpop.f32.mrb[32].mxu1 }
 0xbd8   : > { %1984 = vrot.lane.b32.xlu1 %v1974_v25, %s3930_s19  ;;  %1982 = vrot.lane.b32.xlu0 %v1974_v25, %s3928_s18  ;;  %v1976_v26 = vpop.f32.mrb[33].mxu1  ;;  %v2518_v36 = vpack.c.bf16 %v1974_v25, %v1974_v25  ;;  %s4652_s18 = smov 8   ;;  %s4653_s19 = smov 16  }
 0xbd9   : > { %v1978_v28 = vpop.f32.mrb[34].mxu1 }
 0xbda   : > { %v1979_v29 = vpop.f32.mrb[35].mxu1 }
 0xbdc   : > { %1986 = vrot.lane.b32.xlu1 %v1974_v25, %s3927_s17  ;;  %1988 = vrot.lane.b32.xlu0 %v1974_v25, %s4648_s29  ;;  %s4651_s17 = smov 32  }
 0xbe0   : > { %1990 = vrot.lane.b32.xlu1 %v1974_v25, %s4649_s30  ;;  %2002 = vrot.lane.b32.xlu0 %v1974_v25, %s4650_s0 }
 0xc4a   : > { %v1985_v30 = vpop.permute.xlu1 %1984  ;;  %v1983_v31 = vpop.permute.xlu0 %1982 }
 0xc4b   : > { %2154 = vrot.lane.b32.xlu0 %v1985_v30, %s4650_s0  ;;  %2078 = vrot.lane.b32.xlu1 %v1983_v31, %s4650_s0  ;;  %v2520_v37 = vpack.c.bf16 %v1985_v30, %v1985_v30  ;;  %v2519_v56 = vpack.c.bf16 %v1983_v31, %v1983_v31 }
 0xc4e   : > { %v4363_v32 = vpop.permute.xlu1 %1986  ;;  %v1989_v33 = vpop.permute.xlu0 %1988 }
 0xc4f   : > { %2230 = vrot.lane.b32.xlu1 %v4363_v32, %s4650_s0  ;;  %2306 = vrot.lane.b32.xlu0 %v1989_v33, %s4650_s0  ;;  %v2521_v13 = vpack.c.bf16 %v4363_v32, %v4363_v32 }
 0xc52   : > { %v1991_v34 = vpop.permute.xlu1 %1990  ;;  %v2003_v35 = vpop.permute.xlu0 %2002 }
 0xc53   : > { %2382 = vrot.lane.b32.xlu1 %v1991_v34, %s4650_s0  ;;  %3683 = vmatpush3.xpose.msk.msra.mxu1 %vm660_vm2, %v2003_v35 }
 0xc54   : > { %1996 = vrot.lane.b32.xlu0 %v1976_v26, %s4648_s29  ;;  %3687 = vmatprep.subr.mxu1 %v3929_v27  ;;  %s4655_s29 = smov 40  }
 0xc56   : > { %3685 = vmatmul.mubr.msk.f32.vlgmr.msra.gmra.mrb[14].mxu1 %vm660_vm2, %v1974_v25 }
 0xc57   : > { %1999 = vrot.lane.b32.xlu1 %v1976_v26, %s4649_s30  ;;  %3689 = vmatprep.mubr.msk.f32.mxu1 %vm3931_vm1, %v3929_v27 }
 0xc5b   : > { %2525 = vrot.lane.b32.xlu1 %v2518_v36, %s4651_s17 }
 0xc5f   : > { %2623 = vrot.lane.b32.xlu1 %v2520_v37, %s4651_s17 }
 0xcbd   : > { %v2079_v38 = vpop.permute.xlu1 %2078  ;;  %v2155_v39 = vpop.permute.xlu0 %2154 }
 0xcbe   : > { %3688 = vmatpush3.xpose.msk.msra.mxu1 %vm660_vm2, %v2079_v38 }
 0xcbf   : > { %3692 = vmatprep.subr.mxu1 %v3929_v27 }
 0xcc1   : > { %v2231_v40 = vpop.permute.xlu1 %2230  ;;  %3690 = vmatmul.mubr.msk.f32.vlgmr.msra.gmra.mrb[36].mxu1 %vm660_vm2, %v1983_v31  ;;  %v2307_v43 = vpop.permute.xlu0 %2306 }
 0xcc2   : > { %3693 = vmatpush3.xpose.msk.msra.mxu1 %vm660_vm2, %v2155_v39  ;;  %3694 = vmatprep.mubr.msk.f32.mxu1 %vm3931_vm1, %v3929_v27 }
 0xcc3   : > { %3697 = vmatprep.subr.mxu1 %v3929_v27 }
 0xcc5   : > { %v2383_v41 = vpop.permute.xlu1 %2382  ;;  %3695 = vmatmul.mubr.msk.f32.vlgmr.msra.gmra.mrb[38].mxu1 %vm660_vm2, %v1985_v30 }
 0xcc6   : > { %3698 = vmatpush3.xpose.msk.msra.mxu1 %vm660_vm2, %v2231_v40  ;;  %3699 = vmatprep.mubr.msk.f32.mxu1 %vm3931_vm1, %v3929_v27  ;;  %v1997_v14 = vpop.permute.xlu0 %1996 }
 0xcc7   : > { %3702 = vmatprep.subr.mxu1 %v3929_v27  ;;  %v2522_v17 = vpack.c.bf16 %v1997_v14, %v1997_v14 }
 0xcc9   : > { %3700 = vmatmul.mubr.msk.f32.vlgmr.msra.gmra.mrb[40].mxu1 %vm660_vm2, %v4363_v32  ;;  %v4392_v45 = vpop.permute.xlu1 %1999 }
 0xcca   : > { %3703 = vmatpush3.xpose.msk.msra.mxu1 %vm660_vm2, %v2307_v43  ;;  %3704 = vmatprep.mubr.msk.f32.mxu1 %vm3931_vm1, %v3929_v27 }
 0xccb   : > { %3707 = vmatprep.subr.mxu1 %v3929_v27 }
 0xccd   : > { %3705 = vmatmul.mubr.msk.f32.vlgmr.msra.gmra.mrb[42].mxu1 %vm660_vm2, %v1989_v33  ;;  %v2526_v46 = vpop.permute.xlu1 %2525 }
 0xcce   : > { %3708 = vmatpush3.xpose.msk.msra.mxu1 %vm660_vm2, %v2383_v41  ;;  %3709 = vmatprep.mubr.msk.f32.mxu1 %vm3931_vm1, %v3929_v27  ;;  %v2531_v47 = vsel %vm1187_vm3, %v2526_v46, 0 }
 0xccf   : > { %3712 = vmatprep.subr.bf16.mxu1 %v3929_v27 }
 0xcd1   : > { %3710 = vmatmul.mubr.msk.f32.vlgmr.msra.gmra.mrb[44].mxu1 %vm660_vm2, %v1991_v34  ;;  %v2624_v48 = vpop.permute.xlu1 %2623 }
 0xcd2   : > { %v2629_v49 = vsel %vm1187_vm3, %v2624_v48, 0  ;;  %3713 = vmatpush3.bf16.msra.mxu1 %v2531_v47  ;;  %3714 = vmatprep.mubr.msk.bf16.mxu1 %vm3931_vm1, %v3929_v27 }
 0xcd3   : > { %3725 = vmatpush3.bf16.msra.mxu0 %v2629_v49  ;;  %3718 = vmatprep.subr.bf16.mxu1 %v3929_v27 }
 0xcd4   : > { %3736 = vmatprep.subr.bf16.mxu0 %v3929_v27 }
 0xd29   : > { %v2074_v51 = vpop.f32.mrb[14].mxu1 }
 0xd2a   : > { %v2075_v52 = vadd.f32 %v2074_v51, %v4139_v53  ;;  %v3686_v54 = vpop.f32.mrb[15].mxu1 }
 0xd2c   : > { %v2458_v55 = vsel %vm660_vm2, %v2075_v52, -inf }
 0xd2d   : > { %2459 = vmax.xlane.f32.xlu0 %v2458_v55 }
 0xd43   : > { %2574 = vrot.lane.b32.xlu0 %v2519_v56, %s4651_s17 }
 0xd94   : > { %v2150_v57 = vpop.f32.mrb[36].mxu1 }
 0xd95   : > { %v2151_v58 = vadd.f32 %v2150_v57, %v4139_v53  ;;  %v3691_v59 = vpop.f32.mrb[37].mxu1 }
 0xd97   : > { %v2461_v60 = vsel %vm660_vm2, %v2151_v58, -inf }
 0xd98   : > { %2462 = vmax.xlane.f32.xlu1 %v2461_v60  ;;  %v2226_v61 = vpop.f32.mrb[38].mxu1 }
 0xd99   : > { %v2227_v62 = vadd.f32 %v2226_v61, %v4139_v53  ;;  %v3696_v63 = vpop.f32.mrb[39].mxu1 }
 0xd9b   : > { %v2464_v2 = vsel %vm660_vm2, %v2227_v62, -inf }
 0xd9c   : > { %2465 = vmax.xlane.f32.xlu0 %v2464_v2  ;;  %v2302_v3 = vpop.f32.mrb[40].mxu1 }
 0xd9d   : > { %v2303_v4 = vadd.f32 %v2302_v3, %v4139_v53  ;;  %v3701_v6 = vpop.f32.mrb[41].mxu1 }
 0xd9f   : > { %v2467_v7 = vsel %vm660_vm2, %v2303_v4, -inf }
 0xda0   : > { %2468 = vmax.xlane.f32.xlu0 %v2467_v7  ;;  %v2378_v8 = vpop.f32.mrb[42].mxu1 }
 0xda1   : > { %v3706_v9 = vpop.f32.mrb[43].mxu1  ;;  %v2379_v19 = vadd.f32 %v2378_v8, %v4139_v53 }
 0xda3   : > { %v2470_v24 = vsel %vm660_vm2, %v2379_v19, -inf }
 0xda4   : > { %v2454_v10 = vpop.f32.mrb[44].mxu1 }
 0xda5   : > { %v2455_v5 = vadd.f32 %v2454_v10, %v4139_v53  ;;  %v3711_v12 = vpop.f32.mrb[45].mxu1  ;;  %v2523_v53 = vpack.c.bf16 %v4392_v45, %v4392_v45 }
 0xda7   : > { %v2473_v0 = vsel %vm660_vm2, %v2455_v5, -inf }
 0xda8   : > { %2474 = vmax.xlane.f32.xlu0 %v2473_v0 }
 0xda9   : > { %2672 = vrot.lane.b32.xlu1 %v2521_v13, %s4651_s17 }
 0xdba   : > { %v2460_v15 = vpop.xlane.xlu0 %2459 }
 0xdbb   : > { %v2476_v16 = vsub.f32 %v2075_v52, %v2460_v15 }
 0xdbd   : > { %v2482_v18 = vmul.f32 1.442695, %v2476_v16 }
 0xdbe   : > { %2721 = vrot.lane.b32.xlu0 %v2522_v17, %s4651_s17  ;;  %v2575_v21 = vpop.permute.xlu0 %2574 }
 0xdbf   : > { %3890 = vpow2.f32 %v2482_v18  ;;  %v2580_v23 = vsel %vm1187_vm3, %v2575_v21, 0 }
 0xdc9   : > { %v4426_v20 = vpop.eup %3890 }
 0xdca   : > { %v2512_v22 = vpack.c.bf16 %v4426_v20, %v4426_v20 }
 0xdcc   : > { %3715 = vmatmul.mubr.msk.bf16.vlgmr.msra.gmra.mrb[48].mxu1 %vm660_vm2, %v2512_v22 }
 0xdcd   : > { %3719 = vmatpush3.bf16.msra.mxu1 %v2580_v23  ;;  %2471 = vmax.xlane.f32.xlu1 %v2470_v24 }
 0xdce   : > { %3720 = vmatprep.mubr.msk.bf16.mxu1 %vm3931_vm1, %v3929_v27  ;;  %3730 = vmatprep.subr.bf16.mxu1 %v3929_v27 }
 0xdde   : > { %2770 = vrot.lane.b32.xlu1 %v2523_v53, %s4651_s17 }
 0xe25   : > { %v2463_v25 = vpop.xlane.xlu1 %2462 }
 0xe26   : > { %v2477_v26 = vsub.f32 %v2151_v58, %v2463_v25 }
 0xe28   : > { %v2484_v28 = vmul.f32 1.442695, %v2477_v26 }
 0xe29   : > { %v2466_v29 = vpop.xlane.xlu0 %2465  ;;  %v2673_v36 = vpop.permute.xlu1 %2672 }
 0xe2a   : > { %3892 = vpow2.f32 %v2484_v28  ;;  %v2478_v30 = vsub.f32 %v2227_v62, %v2466_v29  ;;  %v2678_v41 = vsel %vm1187_vm3, %v2673_v36, 0 }
 0xe2c   : > { %v2486_v31 = vmul.f32 1.442695, %v2478_v30 }
 0xe2d   : > { %v2469_v32 = vpop.xlane.xlu0 %2468 }
 0xe2e   : > { %3894 = vpow2.f32 %v2486_v31  ;;  %v2479_v33 = vsub.f32 %v2303_v4, %v2469_v32  ;;  %v2494_v4 = vsel %vm660_vm2, %v4426_v20, 0.0  ;;  %v3833_v31 = vld [vmem:[%s4620_s4 + $0x18] sm:$0xff]   ;;  %v3834_v32 = vld [vmem:[%s4620_s4 + $0x20] sm:$0xff]  }
 0xe30   : > { %v2488_v34 = vmul.f32 1.442695, %v2479_v33 }
 0xe32   : > { %3896 = vpow2.f32 %v2488_v34  ;;  %v3835_v34 = vld [vmem:[%s4620_s4 + $0x28] sm:$0xff]  }
 0xe34   : > { %v3893_v35 = vpop.eup %3892 }
 0xe35   : > { %v2475_v37 = vpop.xlane.xlu0 %2474  ;;  %v2497_v38 = vsel %vm660_vm2, %v3893_v35, 0.0  ;;  %v2513_v39 = vpack.c.bf16 %v3893_v35, %v3893_v35 }
 0xe36   : > { %v2481_v40 = vsub.f32 %v2455_v5, %v2475_v37  ;;  %2498 = vadd.xlane.f32.xlu0 %v2497_v38 }
 0xe37   : > { %3721 = vmatmul.mubr.msk.bf16.vlgmr.msra.gmra.mrb[52].mxu1 %vm660_vm2, %v2513_v39 }
 0xe38   : > { %v3895_v43 = vpop.eup %3894  ;;  %v2492_v45 = vmul.f32 1.442695, %v2481_v40  ;;  %3731 = vmatpush3.bf16.msra.mxu1 %v2678_v41  ;;  %3732 = vmatprep.mubr.msk.bf16.mxu1 %vm3931_vm1, %v3929_v27 }
 0xe39   : > { %v2722_v46 = vpop.permute.xlu0 %2721  ;;  %v2500_v47 = vsel %vm660_vm2, %v3895_v43, 0.0  ;;  %v2514_v48 = vpack.c.bf16 %v3895_v43, %v3895_v43  ;;  %3742 = vmatprep.subr.bf16.mxu1 %v3929_v27 }
 0xe3a   : > { %3898 = vpow2.f32 %v2492_v45  ;;  %v2727_v49 = vsel %vm1187_vm3, %v2722_v46, 0  ;;  %2501 = vadd.xlane.f32.xlu1 %v2500_v47 }
 0xe3b   : > { %3727 = vmatmul.mubr.msk.bf16.vlgmr.msra.gmra.mrb[24].mxu0 %vm660_vm2, %v2514_v48 }
 0xe3c   : > { %v3897_v51 = vpop.eup %3896  ;;  %3737 = vmatpush3.bf16.msra.mxu0 %v2727_v49  ;;  %3738 = vmatprep.mubr.msk.bf16.mxu0 %vm3931_vm1, %v3929_v27 }
 0xe3d   : > { %v2503_v52 = vsel %vm660_vm2, %v3897_v51, 0.0  ;;  %v2515_v54 = vpack.c.bf16 %v3897_v51, %v3897_v51  ;;  %3748 = vmatprep.subr.bf16.mxu0 %v3929_v27 }
 0xe3e   : > { %2504 = vadd.xlane.f32.xlu0 %v2503_v52 }
 0xe3f   : > { %3733 = vmatmul.mubr.msk.bf16.vlgmr.msra.gmra.mrb[56].mxu1 %vm660_vm2, %v2515_v54 }
 0xe40   : > { %3744 = vmatprep.mubr.msk.bf16.mxu1 %vm3931_vm1, %v3929_v27 }
 0xe44   : > { %v3899_v55 = vpop.eup %3898 }
 0xe45   : > { %v2509_v56 = vsel %vm660_vm2, %v3899_v55, 0.0  ;;  %v2517_v62 = vpack.c.bf16 %v3899_v55, %v3899_v55 }
 0xe46   : > { %2510 = vadd.xlane.f32.xlu1 %v2509_v56 }
 0xe5a   : > { %v2472_v57 = vpop.xlane.xlu1 %2471 }
 0xe5b   : > { %v2480_v58 = vsub.f32 %v2379_v19, %v2472_v57 }
 0xe5d   : > { %v2490_v59 = vmul.f32 1.442695, %v2480_v58 }
 0xe5e   : > { %v2771_v60 = vpop.permute.xlu1 %2770 }
 0xe5f   : > { %3900 = vpow2.f32 %v2490_v59  ;;  %v2776_v61 = vsel %vm1187_vm3, %v2771_v60, 0 }
 0xe60   : > { %3743 = vmatpush3.bf16.msra.mxu1 %v2776_v61 }
 0xe63   : > { %3745 = vmatmul.mubr.msk.bf16.vlgmr.msra.gmra.mrb[60].mxu1 %vm660_vm2, %v2517_v62 }
 0xe64   : > { %3051 = vmatprep.mubr.bf16.mxu1 %v3926_v11 }
 0xe69   : > { %v3901_v63 = vpop.eup %3900 }
 0xe6a   : > { %v2506_v2 = vsel %vm660_vm2, %v3901_v63, 0.0  ;;  %v2516_v3 = vpack.c.bf16 %v3901_v63, %v3901_v63 }
 0xe6b   : > { %2507 = vadd.xlane.f32.xlu0 %v2506_v2 }
 0xe6c   : > { %3739 = vmatmul.mubr.msk.bf16.vlgmr.msra.gmra.mrb[28].mxu0 %vm660_vm2, %v2516_v3 }
 0xe6d   : > { %3754 = vmatprep.mubr.msk.bf16.mxu0 %vm3931_vm1, %v3929_v27  ;;  %3749 = vmatpush3.bf16.msra.mxu0 %v3833_v31 }
 0xe6e   : > { %3750 = vmatprep.subr.bf16.mxu0 %v3929_v27 }
 0xe6f   : > { %2495 = vadd.xlane.f32.xlu0 %v2494_v4  ;;  %v3479_v4 = vld [vmem:[%s4621_s5 + $0x1] ss:$0 sm:$0xff] }
 0xe71   : > { %3751 = vmatpush3.bf16.msra.mxu0 %v3834_v32 }
 0xe72   : > { %3752 = vmatprep.subr.bf16.mxu0 %v3929_v27 }
 0xe75   : > { %3753 = vmatpush3.bf16.msra.mxu0 %v3835_v34 }
 0xe76   : > { %3172 = vmatprep.subr.bf16.mxu0 %v3926_v11 }
 0xe9f   : > { %v2567_v6 = vpop.f32.mrb[48].mxu1 }
 0xea0   : > { %v3716_v7 = vpop.f32.mrb[49].mxu1 }
 0xea1   : > { %v2570_v8 = vpop.f32.mrb[50].mxu1 }
 0xea2   : > { %v3717_v9 = vpop.f32.mrb[51].mxu1 }
 0xec3   : > { %v2499_v10 = vpop.xlane.xlu0 %2498 }
 0xec4   : > { %3902 = vrcp.f32 %v2499_v10 }
 0xec7   : > { %v2502_v5 = vpop.xlane.xlu1 %2501 }
 0xec8   : > { %3904 = vrcp.f32 %v2502_v5 }
 0xecb   : > { %v2505_v12 = vpop.xlane.xlu0 %2504 }
 0xecc   : > { %3906 = vrcp.f32 %v2505_v12 }
 0xece   : > { %v3903_v13 = vpop.eup %3902 }
 0xed2   : > { %v3905_v18 = vpop.eup %3904 }
 0xed3   : > { %v2511_v30 = vpop.xlane.xlu1 %2510 }
 0xed4   : > { %3908 = vrcp.f32 %v2511_v30  ;;  %v3854_v30 = vld [vmem:[%s4626_s10 + $0xa8] sm:$0xff]  }
 0xed6   : > { %v3907_v24 = vpop.eup %3906 }
 0xede   : > { %v3909_v35 = vpop.eup %3908 }
 0xef8   : > { %v2508_v33 = vpop.xlane.xlu0 %2507 }
 0xef9   : > { %3910 = vrcp.f32 %v2508_v33 }
 0xefc   : > { %v2496_v49 = vpop.xlane.xlu0 %2495 }
 0xefd   : > { %3912 = vrcp.f32 %v2496_v49 }
 0xf03   : > { %v3911_v41 = vpop.eup %3910 }
 0xf07   : > { %v3913_v52 = vpop.eup %3912 }
 0xf08   : > { %v2824_v54 = vmul.f32 %v3913_v52, %v2567_v6 }
 0xf0a   : > { %v2616_v0 = vpop.f32.mrb[52].mxu1 }
 0xf0b   : > { %v2825_v14 = vmul.f32 %v3903_v13, %v2616_v0  ;;  %v3722_v15 = vpop.f32.mrb[53].mxu1 }
 0xf0c   : > { %v2619_v16 = vpop.f32.mrb[54].mxu1 }
 0xf0d   : > { %2831 = vrot.lane.b32.xlu1 %v2825_v14, %s4652_s18  ;;  %v3723_v17 = vpop.f32.mrb[55].mxu1  ;;  %v3836_v16 = vld [vmem:[%s4624_s8 + $0x30] ss:$8 sps:$4 sm:$0xff]  }
 0xf0e   : > { %v2665_v19 = vpop.f32.mrb[24].mxu0  ;;  %v3841_v17 = vld [vmem:[%s4624_s8 + $0x44] ss:$8 sps:$4 sm:$0xff]  }
 0xf0f   : > { %v2826_v20 = vmul.f32 %v3905_v18, %v2665_v19  ;;  %v3728_v21 = vpop.f32.mrb[25].mxu0  ;;  %v3839_v18 = vld [vmem:[%s4624_s8 + $0x40] ss:$8 sps:$4 sm:$0xff]   ;;  %v3844_v19 = vld [vmem:[%s4624_s8 + $0x54] ss:$8 sps:$4 sm:$0xff]  }
 0xf10   : > { %v2668_v22 = vpop.f32.mrb[26].mxu0  ;;  %v3845_v21 = vld [vmem:[%s4626_s10 + $0x60] sm:$0xff]  }
 0xf11   : > { %v3729_v23 = vpop.f32.mrb[27].mxu0  ;;  %2835 = vrot.lane.b32.xlu0 %v2826_v20, %s4653_s19  ;;  %v3842_v20 = vld [vmem:[%s4624_s8 + $0x50] ss:$8 sps:$4 sm:$0xff]   ;;  %v3846_v22 = vld [vmem:[%s4626_s10 + $0x68] sm:$0xff]  }
 0xf12   : > { %v2714_v53 = vpop.f32.mrb[56].mxu1  ;;  %v3847_v23 = vld [vmem:[%s4626_s10 + $0x70] sm:$0xff]  }
 0xf13   : > { %v2827_v25 = vmul.f32 %v3907_v24, %v2714_v53  ;;  %v3734_v26 = vpop.f32.mrb[57].mxu1  ;;  %v3848_v24 = vld [vmem:[%s4626_s10 + $0x78] sm:$0xff]   ;;  %v3849_v53 = vld [vmem:[%s4626_s10 + $0x80] sm:$0xff]  }
 0xf14   : > { %v2717_v28 = vpop.f32.mrb[58].mxu1  ;;  %v3851_v26 = vld [vmem:[%s4626_s10 + $0x90] sm:$0xff]  }
 0xf15   : > { %2839 = vrot.lane.b32.xlu1 %v2827_v25, %s4654_s27  ;;  %v3735_v29 = vpop.f32.mrb[59].mxu1  ;;  %v3850_v25 = vld [vmem:[%s4626_s10 + $0x88] sm:$0xff]   ;;  %v3852_v28 = vld [vmem:[%s4626_s10 + $0x98] sm:$0xff]  }
 0xf16   : > { %v3853_v29 = vld [vmem:[%s4626_s10 + $0xa0] sm:$0xff]  }
 0xf36   : > { %v2812_v36 = vpop.f32.mrb[60].mxu1 }
 0xf37   : > { %v2829_v37 = vmul.f32 %v3909_v35, %v2812_v36  ;;  %v3746_v38 = vpop.f32.mrb[61].mxu1  ;;  %v3482_v35 = vld [vmem:[%s4622_s6 + $0x1] ss:$0 sm:$0xff] }
 0xf38   : > { %v2815_v39 = vpop.f32.mrb[62].mxu1 }
 0xf39   : > { %2847 = vrot.lane.b32.xlu0 %v2829_v37, %s4655_s29  ;;  %v3747_v40 = vpop.f32.mrb[63].mxu1  ;;  %v3483_v37 = vld [vmem:[%s4623_s7 + $0x1] ss:$0 sm:$0xff] }
 0xf3f   : > { %v2763_v43 = vpop.f32.mrb[28].mxu0 }
 0xf40   : > { %v2828_v45 = vmul.f32 %v3911_v41, %v2763_v43  ;;  %v3740_v46 = vpop.f32.mrb[29].mxu0  ;;  %v3855_v41 = vld [vmem:[%s4626_s10 + $0xb0] sm:$0xff]   ;;  %v3856_v43 = vld [vmem:[%s4626_s10 + $0xb8] sm:$0xff]  }
 0xf41   : > { %v2766_v47 = vpop.f32.mrb[30].mxu0 }
 0xf42   : > { %v3741_v48 = vpop.f32.mrb[31].mxu0  ;;  %2843 = vrot.lane.b32.xlu1 %v2828_v45, %s4651_s17  ;;  %v3490_v45 = vld [vmem:[%s4625_s9 + $0x2] sm:$0x3] }
 0xf43   : > { %v2979_v46 = vrot.slane %v3490_v45, %v1634_v42  ;;  %v2983_v47 = vrot.slane %v3490_v45, %v1638_v44  ;;  %v3523_v42 = vld [vmem:[%s4627_s11 + $0x1] ss:$0 sm:$0xff] }
 0xf7f   : > { %v2832_v51 = vpop.permute.xlu1 %2831 }
 0xf80   : > { %v2850_v57 = vsel %vm660_vm2, %v2824_v54, %v2832_v51 }
 0xf83   : > { %v2836_v55 = vpop.permute.xlu0 %2835 }
 0xf84   : > { %v2851_v58 = vsel %vm1509_vm5, %v2850_v57, %v2836_v55 }
 0xf87   : > { %v2840_v56 = vpop.permute.xlu1 %2839 }
 0xf88   : > { %v2852_v59 = vsel %vm1511_vm6, %v2851_v58, %v2840_v56 }
 0xfab   : > { %v2848_v61 = vpop.permute.xlu0 %2847 }
 0xfb4   : > { %v2844_v60 = vpop.permute.xlu1 %2843 }
 0xfb5   : > { %v2853_v62 = vsel %vm1513_vm7, %v2852_v59, %v2844_v60 }
 0xfb6   : > { %v2854_v63 = vsel %vm1515_vm8, %v2853_v62, %v2848_v61 }
 0xfb7   : > { %v2855_v2 = vpack.c.bf16 %v2854_v63, %v2854_v63 }
 0xfb9   : > { %3755 = vmatmul.mubr.msk.bf16.vlgmr.msra.gmra.mrb[32].mxu0 %vm527_vm0, %v2855_v2 }
 0xfba   : > { %3173 = vmatpush1.bf16.msra.mxu0 %v3845_v21 }
 0xfbb   : > { %3174 = vmatprep.subr.bf16.mxu0 %v3926_v11 }
 0xfbe   : > { %3175 = vmatpush1.bf16.msra.mxu0 %v3846_v22 }
 0xfbf   : > { %3176 = vmatprep.subr.bf16.mxu0 %v3926_v11 }
 0xfc2   : > { %3177 = vmatpush1.bf16.msra.mxu0 %v3847_v23 }
 0xfc3   : > { %3178 = vmatprep.subr.bf16.mxu0 %v3926_v11 }
 0xfc6   : > { %3179 = vmatpush1.bf16.msra.mxu0 %v3848_v24 }
 0xfc7   : > { %3180 = vmatprep.subr.bf16.mxu0 %v3926_v11 }
 0xfca   : > { %3181 = vmatpush1.bf16.msra.mxu0 %v3849_v53 }
 0xfcb   : > { %3182 = vmatprep.subr.bf16.mxu0 %v3926_v11 }
 0xfce   : > { %3183 = vmatpush1.bf16.msra.mxu0 %v3850_v25 }
 0xfcf   : > { %3184 = vmatprep.subr.bf16.mxu0 %v3926_v11 }
 0xfd2   : > { %3185 = vmatpush1.bf16.msra.mxu0 %v3851_v26 }
 0xfd3   : > { %3186 = vmatprep.subr.bf16.mxu0 %v3926_v11 }
 0xfd6   : > { %3187 = vmatpush1.bf16.msra.mxu0 %v3852_v28 }
 0xfd7   : > { %3188 = vmatprep.subr.bf16.mxu0 %v3926_v11 }
 0xfda   : > { %3189 = vmatpush1.bf16.msra.mxu0 %v3853_v29 }
 0xfdb   : > { %3190 = vmatprep.subr.bf16.mxu0 %v3926_v11 }
 0xfde   : > { %3191 = vmatpush1.bf16.msra.mxu0 %v3854_v30 }
 0xfdf   : > { %3192 = vmatprep.subr.bf16.mxu0 %v3926_v11 }
 0xfe2   : > { %3193 = vmatpush1.bf16.msra.mxu0 %v3855_v41 }
 0xfe3   : > { %3194 = vmatprep.subr.bf16.mxu0 %v3926_v11 }
 0xfe6   : > { %3195 = vmatpush1.bf16.msra.mxu0 %v3856_v43 }
0x108c   : > { %v2918_v3 = vpop.f32.mrb[32].mxu0 }
0x108d   : > { %v2924_v6 = vadd.f32 %v2918_v3, %v4321_v1  ;;  %v3756_v7 = vpop.f32.mrb[33].mxu0  ;;  %v3838_v1 = vld [vmem:[%s4624_s8 + $0x34] ss:$8 sps:$4 sm:$0xff]  }
0x108e   : > { %v2921_v8 = vpop.f32.mrb[34].mxu0  ;;  %3019 = vmatprep.subr.bf16.mxu1 %v3838_v1  ;;  %v3538_v1 = vld [vmem:[%s4629_s13] ss:$0 sm:$0xff] }
0x108f   : > { %v4492_v9 = vadd.f32 %v3479_v4, %v2924_v6  ;;  %v3757_v10 = vpop.f32.mrb[35].mxu0  ;;  %3020 = vmatpush1.bf16.msra.mxu1 %v3836_v16  ;;  %v3857_v8 = vld [vmem:[%s4630_s14] sm:$0xff]  }
0x1090   : > { %3021 = vmatprep.subr.bf16.mxu1 %v3841_v17  ;;  %v3859_v10 = vld [vmem:[%s4630_s14 + $0x10] sm:$0xff]  }
0x1091   : > { %v2938_v5 = vsel %vm527_vm0, %v4492_v9, 0.0 }
0x1092   : > { %2939 = vadd.xlane.f32.xlu1 %v2938_v5 }
0x1093   : > { %3022 = vmatpush1.bf16.msra.mxu1 %v3839_v18 }
0x1094   : > { %3023 = vmatprep.subr.bf16.mxu1 %v3844_v19 }
0x1097   : > { %3024 = vmatpush1.bf16.msra.mxu1 %v3842_v20 }
0x1098   : > { %3758 = vmatprep.subr.bf16.mxu1 %v3929_v27 }
0x111f   : > { %v2940_v12 = vpop.xlane.xlu1 %2939 }
0x1120   : > { %v2941_v13 = vmul.f32 0.020833334, %v2940_v12 }
0x1122   : > { %v2942_v0 = vsub.f32 %v4492_v9, %v2941_v13 }
0x1124   : > { %v2943_v14 = vmul.f32 %v2942_v0, %v2942_v0 }
0x1126   : > { %v2944_v15 = vsel %vm527_vm0, %v2943_v14, 0.0  ;;  %v3537_v14 = vld [vmem:[%s4628_s12] ss:$0 sm:$0xff] }
0x1127   : > { %2945 = vadd.xlane.f32.xlu0 %v2944_v15 }
0x11b4   : > { %v2946_v31 = vpop.xlane.xlu0 %2945 }
0x11b5   : > { %v2947_v32 = vmul.f32 0.020833334, %v2946_v31 }
0x11b7   : > { %v2948_v33 = vadd.f32 1e-05, %v2947_v32 }
0x11b9   : > { %3914 = vrsqrt.f32 %v2948_v33 }
0x11c3   : > { %v3915_v34 = vpop.eup %3914 }
0x11c4   : > { %v2950_v36 = vmul.f32 %v3915_v34, %v2942_v0 }
0x11c6   : > { %v2957_v38 = vmul.f32 %v3482_v35, %v2950_v36 }
0x11c8   : > { %v2964_v39 = vadd.f32 %v3483_v37, %v2957_v38 }
0x11ca   : > { %v2965_v40 = vpack.c.bf16 %v2964_v39, %v2964_v39 }
0x11cc   : > { %3497 = vmatmul.mubr.msk.bf16.vlgmr.msra.gmra.mrb[64].mxu1 %vm527_vm0, %v2965_v40 }
0x11cd   : > { %3764 = vmatprep.mubr.msk.bf16.mxu1 %vm3931_vm1, %v3929_v27  ;;  %3759 = vmatpush3.bf16.msra.mxu1 %v3857_v8 }
0x11ce   : > { %3760 = vmatprep.subr.bf16.mxu1 %v3929_v27 }
0x129f   : > { %v3053_v48 = vpop.f32.mrb[64].mxu1 }
0x12a0   : > { %v3054_v49 = vadd.f32 %v3053_v48, %v2979_v46  ;;  %v3055_v51 = vpop.f32.mrb[65].mxu1 }
0x12a1   : > { %v3056_v52 = vadd.f32 %v3055_v51, %v2983_v47  ;;  %v3057_v11 = vpop.f32.mrb[66].mxu1 }
0x12a2   : > { %v3060_v54 = vmax.f32 %v3054_v49, 0.0  ;;  %v3058_v55 = vpop.f32.mrb[67].mxu1 }
0x12a3   : > { %v3061_v56 = vmax.f32 %v3056_v52, 0.0 }
0x12a4   : > { %v3062_v58 = vpack.c.bf16 %v3060_v54, %v3060_v54 }
0x12a5   : > { %v3063_v57 = vpack.c.bf16 %v3061_v56, %v3061_v56 }
0x12a7   : > { %3536 = vmatprep.mubr.msk.bf16.mxu0 %vm1823_vm9, %v3063_v57 }
0x12a8   : > { %3205 = vmatmul.mubr.bf16.vlgmr.msra.gmra.mrb[36].mxu0 %v3062_v58 }
0x137b   : > { %v3206_v59 = vpop.f32.mrb[36].mxu0 }
0x137c   : > { %v3207_v50 = vadd.f32 %v3523_v42, %v3206_v59  ;;  %v3208_v44 = vpop.f32.mrb[37].mxu0 }
0x137d   : > { %v3209_v60 = vpop.f32.mrb[38].mxu0 }
0x137e   : > { %v3210_v61 = vpop.f32.mrb[39].mxu0  ;;  %v3212_v62 = vadd.f32 %v3207_v50, %v4492_v9  ;;  %v3858_v9 = vld [vmem:[%s4630_s14 + $0x8] sm:$0xff]  }
0x137f   : > { %3761 = vmatpush3.bf16.msra.mxu1 %v3858_v9 }
0x1380   : > { %v3215_v63 = vsel %vm527_vm0, %v3212_v62, 0.0  ;;  %3762 = vmatprep.subr.bf16.mxu1 %v3929_v27  ;;  %v3539_v27 = vld [vmem:[%s4631_s15] ss:$0 sm:$0xff] }
0x1381   : > { %3216 = vadd.xlane.f32.xlu0 %v3215_v63 }
0x1383   : > { %3763 = vmatpush3.bf16.msra.mxu1 %v3859_v10 }
0x140e   : > { %v3217_v2 = vpop.xlane.xlu0 %3216 }
0x140f   : > { %v3218_v3 = vmul.f32 0.020833334, %v3217_v2 }
0x1411   : > { %v3219_v4 = vsub.f32 %v3212_v62, %v3218_v3 }
0x1413   : > { %v3220_v6 = vmul.f32 %v3219_v4, %v3219_v4 }
0x1415   : > { %v3221_v7 = vsel %vm527_vm0, %v3220_v6, 0.0 }
0x1416   : > { %3222 = vadd.xlane.f32.xlu1 %v3221_v7 }
0x14a3   : > { %v3223_v5 = vpop.xlane.xlu1 %3222 }
0x14a4   : > { %v3224_v12 = vmul.f32 0.020833334, %v3223_v5 }
0x14a6   : > { %v3225_v13 = vadd.f32 1e-05, %v3224_v12 }
0x14a8   : > { %3916 = vrsqrt.f32 %v3225_v13 }
0x14b2   : > { %v3917_v0 = vpop.eup %3916 }
0x14b3   : > { %v3227_v15 = vmul.f32 %v3917_v0, %v3219_v4 }
0x14b5   : > { %v3234_v16 = vmul.f32 %v3537_v14, %v3227_v15 }
0x14b7   : > { %v3241_v17 = vadd.f32 %v3538_v1, %v3234_v16 }
0x14b9   : > { %v3242_v18 = vpack.c.bf16 %v3241_v17, %v3241_v17 }
0x14bb   : > { %3765 = vmatmul.mubr.msk.bf16.vlgmr.msra.gmra.mrb[68].mxu1 %vm527_vm0, %v3242_v18 }
0x158e   : > { %v3311_v19 = vpop.f32.mrb[68].mxu1 }
0x158f   : > { %v3312_v20 = vadd.f32 %v3539_v27, %v3311_v19  ;;  %v3766_v21 = vpop.f32.mrb[69].mxu1 }
0x1590   : > { %v3314_v22 = vpop.f32.mrb[70].mxu1 }
0x1591   : > { %3317 = vst [vmem:[%s516_s24] sm:$0xff] %v3312_v20  ;;  %v3767_v23 = vpop.f32.mrb[71].mxu1 }
0x1592 PF: > { %s26_s21 = sadd.s32 1, %s3924_s21  }
0x1593   : > { %p23_p4 = scmp.ge.s32.totalorder %s26_s21, 4  }
0x1595   :  { %25 = sbr.rel (!%p23_p4) target bundleno = 2 (0x2), region = 125 }

</bundles_post_ra>
